<compile_context>
chip_gen: v6e
topology: v6e:2x2x1
jax: 0.10.0
libtpu: 0.0.40
codegen_flags: <defaults>
</compile_context>

<pallas_src>
from functools import partial

import jax
import jax.numpy as jnp
from jax.experimental import pallas as pl
from jax.experimental.pallas import tpu as pltpu

LANE = 128


# --------------------------------------------------------------------------- #
# Kernel
# --------------------------------------------------------------------------- #
def skinny_skip_kernel(x_ref, a_ref, priors_ref, w_ref, b_ref, out_ref, *,
                       num_gcn):
    """Fused SkinnySkip forward.

    x_ref      (Np, Dp)            bf16   node features (zero-padded)
    a_ref      (Np, Np)            bf16   D^-1/2 (A+I) D^-1/2 (zero-padded)
    priors_ref (Np, Dp)            f32    priors (zero-padded)
    w_ref      (num_gcn+4, Dp, Dp) bf16   [we1, we2, wg_0..wg_{L-1}, wp1, wp2]
    b_ref      (num_gcn+4, 1, Dp)  f32    matching biases
    out_ref    (Np, Dp)            f32    lane-dense output slab
    """
    f32 = jnp.float32
    bf16 = jnp.bfloat16

    def mm(act, w):
        # bf16 MXU inputs (weights are already bf16), f32 accumulation.
        return jnp.dot(act.astype(bf16), w, preferred_element_type=f32)

    # --- MLP_embed: Linear -> tanh -> Linear -> tanh (elementwise in f32) ---
    h = jnp.tanh(mm(x_ref[...], w_ref[0]) + b_ref[0])
    h = jnp.tanh(mm(h, w_ref[1]) + b_ref[1])
    # dropout(p=0.5) in eval mode -> identity

    a = a_ref[...]  # already bf16, no in-kernel cast / duplicate

    # --- stack of GCNConv layers: relu(A_hat (H W_i) + b_i) ---
    for i in range(num_gcn):
        hw = mm(h, w_ref[2 + i])                                       # (Np, Dp)
        h = jnp.dot(a, hw.astype(bf16), preferred_element_type=f32) + b_ref[2 + i]
        # dropout (identity in eval) then relu
        h = jnp.maximum(h, 0.0)

    # --- MLP_pred: Linear -> tanh -> Linear -> tanh ---
    o = jnp.tanh(mm(h, w_ref[2 + num_gcn]) + b_ref[2 + num_gcn])
    o = jnp.tanh(mm(o, w_ref[3 + num_gcn]) + b_ref[3 + num_gcn])

    # lane-dense (multiple-of-128) store; padded priors columns are zero
    out_ref[...] = o + priors_ref[...]


# --------------------------------------------------------------------------- #
# Plain-JAX glue
# --------------------------------------------------------------------------- #
def build_norm_adj(edge_index, num_nodes):
    """GCN symmetric normalization matching PyG gcn_norm defaults.

    add_remaining_self_loops semantics with unit edge weights: explicit self
    loops are dropped and every node gets exactly one unit-weight self loop.
    Duplicate (non-self) edges accumulate, same as PyG.
    """
    src, dst = edge_index[0], edge_index[1]
    keep = (src != dst).astype(jnp.float32)
    # A[i, j] = weight of edge j -> i (message flows source -> target)
    adj = jnp.zeros((num_nodes, num_nodes), jnp.float32).at[dst, src].add(keep)
    adj = adj + jnp.eye(num_nodes, dtype=jnp.float32)
    deg = adj.sum(axis=1)
    dinv = jnp.where(deg > 0, 1.0 / jnp.sqrt(deg), 0.0)
    return dinv[:, None] * adj * dinv[None, :]


def _round_up(d, m):
    return ((d + m - 1) // m) * m


def _pad2(a, rows, cols):
    return jnp.pad(a, ((0, rows - a.shape[0]), (0, cols - a.shape[1])))


def skinny_skip(x, edge_index, priors, params, *, num_gcn):
    n, out_dim = priors.shape
    f_in = x.shape[1]
    hidden = params["we1"].shape[1]
    inner = params["we2"].shape[1]

    a_norm = build_norm_adj(edge_index, n)

    # Common lane-dense padding: one feature width for every stage so all
    # weights stack into a single slab, and a 128-aligned node axis so A is
    # lane-dense and the A @ (HW) contraction uses aligned MXU tiles.
    d_pad = _round_up(max(f_in, hidden, inner, out_dim), LANE)
    n_pad = _round_up(n, LANE)

    # bf16 pre-cast of matmul operands in the wrapper; biases stay f32.
    x_p = _pad2(x, n_pad, d_pad).astype(jnp.bfloat16)
    a_p = _pad2(a_norm, n_pad, n_pad).astype(jnp.bfloat16)
    pri_p = _pad2(priors, n_pad, d_pad).astype(jnp.float32)

    w_list = ([params["we1"], params["we2"]]
              + [params["wg"][i] for i in range(num_gcn)]
              + [params["wp1"], params["wp2"]])
    b_list = ([params["be1"], params["be2"]]
              + [params["bg"][i] for i in range(num_gcn)]
              + [params["bp1"], params["bp2"]])

    w_slab = jnp.stack([_pad2(w, d_pad, d_pad) for w in w_list]
                       ).astype(jnp.bfloat16)                 # (L+4, Dp, Dp)
    b_slab = jnp.stack([_pad2(b, 1, d_pad) for b in b_list]
                       ).astype(jnp.float32)                  # (L+4, 1, Dp)

    operands = (x_p, a_p, pri_p, w_slab, b_slab)

    vmem_spec = pl.BlockSpec(memory_space=pltpu.MemorySpace.VMEM)
    kernel = partial(skinny_skip_kernel, num_gcn=num_gcn)

    out_p = pl.pallas_call(
        kernel,
        out_shape=jax.ShapeDtypeStruct((n_pad, d_pad), jnp.float32),
        in_specs=[vmem_spec] * len(operands),
        out_specs=vmem_spec,
        compiler_params=pltpu.CompilerParams(
            # Resident footprint at these shapes: x/A (bf16, 32 KiB each),
            # priors + output (f32, 64 KiB each), weight slab (~224 KiB bf16),
            # bias slab (<4 KiB) + temporaries -> well under 1 MiB.  8 MiB
            # leaves ample headroom on every generation (incl. v7x 64 MiB
            # physical / 32 MiB scoped default).
            vmem_limit_bytes=8 << 20,
        ),
    )(*operands)

    return out_p[:n, :out_dim]


# Pure-JAX f32 reference for correctness checking.
def skinny_skip_ref(x, edge_index, priors, params, *, num_gcn):
    a = build_norm_adj(edge_index, priors.shape[0])
    h = jnp.tanh(x @ params["we1"] + params["be1"])
    h = jnp.tanh(h @ params["we2"] + params["be2"])
    for i in range(num_gcn):
        h = jnp.maximum(a @ (h @ params["wg"][i]) + params["bg"][i], 0.0)
    o = jnp.tanh(h @ params["wp1"] + params["bp1"])
    o = jnp.tanh(o @ params["wp2"] + params["bp2"])
    return o + priors


def init_params(key, num_node_features, inner_height, inner_dim, output_dim,
                hidden=32):
    ks = jax.random.split(key, 8)
    s = 0.1
    return {
        # MLP_embed: (F -> 32 -> D)
        "we1": s * jax.random.normal(ks[0], (num_node_features, hidden), jnp.float32),
        "be1": s * jax.random.normal(ks[1], (1, hidden), jnp.float32),
        "we2": s * jax.random.normal(ks[2], (hidden, inner_dim), jnp.float32),
        "be2": s * jax.random.normal(ks[3], (1, inner_dim), jnp.float32),
        # GCN stack: L x (D -> D)
        "wg": s * jax.random.normal(ks[4], (inner_height, inner_dim, inner_dim),
                                    jnp.float32),
        "bg": s * jax.random.normal(ks[5], (inner_height, 1, inner_dim),
                                    jnp.float32),
        # MLP_pred: (D -> 32 -> out)
        "wp1": s * jax.random.normal(ks[6], (inner_dim, hidden), jnp.float32),
        "bp1": jnp.zeros((1, hidden), jnp.float32),
        "wp2": s * jax.random.normal(ks[7], (hidden, output_dim), jnp.float32),
        "bp2": jnp.zeros((1, output_dim), jnp.float32),
    }


if __name__ == "__main__":
    key = jax.random.PRNGKey(0)
    k_x, k_p, k_w = jax.random.split(key, 3)

    N = 16                 # num nodes
    NUM_NODE_FEATURES = 4
    INNER_HEIGHT = 3       # number of GCN layers
    INNER_DIM = 32
    OUTPUT_DIM = 8

    x = jax.random.normal(k_x, (N, NUM_NODE_FEATURES), jnp.float32)
    priors = jax.random.normal(k_p, (N, OUTPUT_DIM), jnp.float32)

    # deterministic small edge list (source, target)
    src = jnp.array([0, 1, 2, 3, 4, 5, 6, 7, 8, 9, 10, 11, 12, 13, 14, 15,
                     0, 5, 3, 9], dtype=jnp.int32)
    dst = jnp.array([1, 2, 3, 4, 5, 6, 7, 8, 9, 10, 11, 12, 13, 14, 15, 0,
                     8, 12, 7, 2], dtype=jnp.int32)
    edge_index = jnp.stack([src, dst])

    params = init_params(k_w, NUM_NODE_FEATURES, INNER_HEIGHT, INNER_DIM,
                         OUTPUT_DIM)

    out = skinny_skip(x, edge_index, priors, params, num_gcn=INNER_HEIGHT)
    out = jax.block_until_ready(out)
    assert out.shape == (N, OUTPUT_DIM)

    ref = skinny_skip_ref(x, edge_index, priors, params, num_gcn=INNER_HEIGHT)
    max_err = float(jnp.max(jnp.abs(out - ref)))
    assert max_err < 0.1, f"mismatch vs f32 reference: max abs err {max_err}"

    print("KERNEL_OK")
</pallas_src>

<mosaic_0001>
module attributes {stable_mosaic.version = 11 : i64} {
  func.func @skinny_skip_kernel(%arg0: memref<128x128xbf16, #tpu.memory_space<vmem>>, %arg1: memref<128x128xbf16, #tpu.memory_space<vmem>>, %arg2: memref<128x128xf32, #tpu.memory_space<vmem>>, %arg3: memref<7x128x128xbf16, #tpu.memory_space<vmem>>, %arg4: memref<7x1x128xf32, #tpu.memory_space<vmem>>, %arg5: memref<128x128xf32, #tpu.memory_space<vmem>>) attributes {dimension_semantics = [], scalar_prefetch = 0 : i64, scratch_operands = 0 : i64, tpu.core_type = #tpu.core_type<tc>} {
    %c0 = arith.constant 0 : index
    %c0_0 = arith.constant 0 : index
    %0 = vector.load %arg0[%c0, %c0_0] : memref<128x128xbf16, #tpu.memory_space<vmem>>, vector<128x128xbf16>
    %c0_1 = arith.constant 0 : index
    %c0_2 = arith.constant 0 : index
    %c0_3 = arith.constant 0 : index
    %1 = vector.load %arg3[%c0_1, %c0_2, %c0_3] : memref<7x128x128xbf16, #tpu.memory_space<vmem>>, vector<1x128x128xbf16>
    %2 = vector.shape_cast %1 : vector<1x128x128xbf16> to vector<128x128xbf16>
    %cst = arith.constant dense<0.000000e+00> : vector<128x128xf32>
    %3 = tpu.matmul %0, %2, %cst {dimension_numbers = #tpu.dot_dimension_numbers<[1], [0], [0], [1], [0, 0, 1, 1], [], []>} : vector<128x128xbf16>, vector<128x128xbf16>, vector<128x128xf32> -> vector<128x128xf32>
    %c0_4 = arith.constant 0 : index
    %c0_5 = arith.constant 0 : index
    %c0_6 = arith.constant 0 : index
    %4 = vector.load %arg4[%c0_4, %c0_5, %c0_6] : memref<7x1x128xf32, #tpu.memory_space<vmem>>, vector<1x1x128xf32>
    %5 = vector.shape_cast %4 : vector<1x1x128xf32> to vector<1x128xf32>
    %6 = vector.broadcast %5 : vector<1x128xf32> to vector<128x128xf32>
    %7 = arith.addf %3, %6 : vector<128x128xf32>
    %8 = math.tanh %7 : vector<128x128xf32>
    %c1 = arith.constant 1 : index
    %c0_7 = arith.constant 0 : index
    %c0_8 = arith.constant 0 : index
    %9 = vector.load %arg3[%c1, %c0_7, %c0_8] : memref<7x128x128xbf16, #tpu.memory_space<vmem>>, vector<1x128x128xbf16>
    %10 = vector.shape_cast %9 : vector<1x128x128xbf16> to vector<128x128xbf16>
    %11 = arith.truncf %8 : vector<128x128xf32> to vector<128x128xbf16>
    %cst_9 = arith.constant dense<0.000000e+00> : vector<128x128xf32>
    %12 = tpu.matmul %11, %10, %cst_9 {dimension_numbers = #tpu.dot_dimension_numbers<[1], [0], [0], [1], [0, 0, 1, 1], [], []>} : vector<128x128xbf16>, vector<128x128xbf16>, vector<128x128xf32> -> vector<128x128xf32>
    %c1_10 = arith.constant 1 : index
    %c0_11 = arith.constant 0 : index
    %c0_12 = arith.constant 0 : index
    %13 = vector.load %arg4[%c1_10, %c0_11, %c0_12] : memref<7x1x128xf32, #tpu.memory_space<vmem>>, vector<1x1x128xf32>
    %14 = vector.shape_cast %13 : vector<1x1x128xf32> to vector<1x128xf32>
    %15 = vector.broadcast %14 : vector<1x128xf32> to vector<128x128xf32>
    %16 = arith.addf %12, %15 : vector<128x128xf32>
    %17 = math.tanh %16 : vector<128x128xf32>
    %c0_13 = arith.constant 0 : index
    %c0_14 = arith.constant 0 : index
    %18 = vector.load %arg1[%c0_13, %c0_14] : memref<128x128xbf16, #tpu.memory_space<vmem>>, vector<128x128xbf16>
    %c2 = arith.constant 2 : index
    %c0_15 = arith.constant 0 : index
    %c0_16 = arith.constant 0 : index
    %19 = vector.load %arg3[%c2, %c0_15, %c0_16] : memref<7x128x128xbf16, #tpu.memory_space<vmem>>, vector<1x128x128xbf16>
    %20 = vector.shape_cast %19 : vector<1x128x128xbf16> to vector<128x128xbf16>
    %21 = arith.truncf %17 : vector<128x128xf32> to vector<128x128xbf16>
    %cst_17 = arith.constant dense<0.000000e+00> : vector<128x128xf32>
    %22 = tpu.matmul %21, %20, %cst_17 {dimension_numbers = #tpu.dot_dimension_numbers<[1], [0], [0], [1], [0, 0, 1, 1], [], []>} : vector<128x128xbf16>, vector<128x128xbf16>, vector<128x128xf32> -> vector<128x128xf32>
    %23 = arith.truncf %22 : vector<128x128xf32> to vector<128x128xbf16>
    %cst_18 = arith.constant dense<0.000000e+00> : vector<128x128xf32>
    %24 = tpu.matmul %18, %23, %cst_18 {dimension_numbers = #tpu.dot_dimension_numbers<[1], [0], [0], [1], [0, 0, 1, 1], [], []>} : vector<128x128xbf16>, vector<128x128xbf16>, vector<128x128xf32> -> vector<128x128xf32>
    %c2_19 = arith.constant 2 : index
    %c0_20 = arith.constant 0 : index
    %c0_21 = arith.constant 0 : index
    %25 = vector.load %arg4[%c2_19, %c0_20, %c0_21] : memref<7x1x128xf32, #tpu.memory_space<vmem>>, vector<1x1x128xf32>
    %26 = vector.shape_cast %25 : vector<1x1x128xf32> to vector<1x128xf32>
    %27 = vector.broadcast %26 : vector<1x128xf32> to vector<128x128xf32>
    %28 = arith.addf %24, %27 : vector<128x128xf32>
    %cst_22 = arith.constant 0.000000e+00 : f32
    %29 = vector.broadcast %cst_22 : f32 to vector<128x128xf32>
    %30 = arith.maximumf %28, %29 : vector<128x128xf32>
    %c3 = arith.constant 3 : index
    %c0_23 = arith.constant 0 : index
    %c0_24 = arith.constant 0 : index
    %31 = vector.load %arg3[%c3, %c0_23, %c0_24] : memref<7x128x128xbf16, #tpu.memory_space<vmem>>, vector<1x128x128xbf16>
    %32 = vector.shape_cast %31 : vector<1x128x128xbf16> to vector<128x128xbf16>
    %33 = arith.truncf %30 : vector<128x128xf32> to vector<128x128xbf16>
    %cst_25 = arith.constant dense<0.000000e+00> : vector<128x128xf32>
    %34 = tpu.matmul %33, %32, %cst_25 {dimension_numbers = #tpu.dot_dimension_numbers<[1], [0], [0], [1], [0, 0, 1, 1], [], []>} : vector<128x128xbf16>, vector<128x128xbf16>, vector<128x128xf32> -> vector<128x128xf32>
    %35 = arith.truncf %34 : vector<128x128xf32> to vector<128x128xbf16>
    %cst_26 = arith.constant dense<0.000000e+00> : vector<128x128xf32>
    %36 = tpu.matmul %18, %35, %cst_26 {dimension_numbers = #tpu.dot_dimension_numbers<[1], [0], [0], [1], [0, 0, 1, 1], [], []>} : vector<128x128xbf16>, vector<128x128xbf16>, vector<128x128xf32> -> vector<128x128xf32>
    %c3_27 = arith.constant 3 : index
    %c0_28 = arith.constant 0 : index
    %c0_29 = arith.constant 0 : index
    %37 = vector.load %arg4[%c3_27, %c0_28, %c0_29] : memref<7x1x128xf32, #tpu.memory_space<vmem>>, vector<1x1x128xf32>
    %38 = vector.shape_cast %37 : vector<1x1x128xf32> to vector<1x128xf32>
    %39 = vector.broadcast %38 : vector<1x128xf32> to vector<128x128xf32>
    %40 = arith.addf %36, %39 : vector<128x128xf32>
    %cst_30 = arith.constant 0.000000e+00 : f32
    %41 = vector.broadcast %cst_30 : f32 to vector<128x128xf32>
    %42 = arith.maximumf %40, %41 : vector<128x128xf32>
    %c4 = arith.constant 4 : index
    %c0_31 = arith.constant 0 : index
    %c0_32 = arith.constant 0 : index
    %43 = vector.load %arg3[%c4, %c0_31, %c0_32] : memref<7x128x128xbf16, #tpu.memory_space<vmem>>, vector<1x128x128xbf16>
    %44 = vector.shape_cast %43 : vector<1x128x128xbf16> to vector<128x128xbf16>
    %45 = arith.truncf %42 : vector<128x128xf32> to vector<128x128xbf16>
    %cst_33 = arith.constant dense<0.000000e+00> : vector<128x128xf32>
    %46 = tpu.matmul %45, %44, %cst_33 {dimension_numbers = #tpu.dot_dimension_numbers<[1], [0], [0], [1], [0, 0, 1, 1], [], []>} : vector<128x128xbf16>, vector<128x128xbf16>, vector<128x128xf32> -> vector<128x128xf32>
    %47 = arith.truncf %46 : vector<128x128xf32> to vector<128x128xbf16>
    %cst_34 = arith.constant dense<0.000000e+00> : vector<128x128xf32>
    %48 = tpu.matmul %18, %47, %cst_34 {dimension_numbers = #tpu.dot_dimension_numbers<[1], [0], [0], [1], [0, 0, 1, 1], [], []>} : vector<128x128xbf16>, vector<128x128xbf16>, vector<128x128xf32> -> vector<128x128xf32>
    %c4_35 = arith.constant 4 : index
    %c0_36 = arith.constant 0 : index
    %c0_37 = arith.constant 0 : index
    %49 = vector.load %arg4[%c4_35, %c0_36, %c0_37] : memref<7x1x128xf32, #tpu.memory_space<vmem>>, vector<1x1x128xf32>
    %50 = vector.shape_cast %49 : vector<1x1x128xf32> to vector<1x128xf32>
    %51 = vector.broadcast %50 : vector<1x128xf32> to vector<128x128xf32>
    %52 = arith.addf %48, %51 : vector<128x128xf32>
    %cst_38 = arith.constant 0.000000e+00 : f32
    %53 = vector.broadcast %cst_38 : f32 to vector<128x128xf32>
    %54 = arith.maximumf %52, %53 : vector<128x128xf32>
    %c5 = arith.constant 5 : index
    %c0_39 = arith.constant 0 : index
    %c0_40 = arith.constant 0 : index
    %55 = vector.load %arg3[%c5, %c0_39, %c0_40] : memref<7x128x128xbf16, #tpu.memory_space<vmem>>, vector<1x128x128xbf16>
    %56 = vector.shape_cast %55 : vector<1x128x128xbf16> to vector<128x128xbf16>
    %57 = arith.truncf %54 : vector<128x128xf32> to vector<128x128xbf16>
    %cst_41 = arith.constant dense<0.000000e+00> : vector<128x128xf32>
    %58 = tpu.matmul %57, %56, %cst_41 {dimension_numbers = #tpu.dot_dimension_numbers<[1], [0], [0], [1], [0, 0, 1, 1], [], []>} : vector<128x128xbf16>, vector<128x128xbf16>, vector<128x128xf32> -> vector<128x128xf32>
    %c5_42 = arith.constant 5 : index
    %c0_43 = arith.constant 0 : index
    %c0_44 = arith.constant 0 : index
    %59 = vector.load %arg4[%c5_42, %c0_43, %c0_44] : memref<7x1x128xf32, #tpu.memory_space<vmem>>, vector<1x1x128xf32>
    %60 = vector.shape_cast %59 : vector<1x1x128xf32> to vector<1x128xf32>
    %61 = vector.broadcast %60 : vector<1x128xf32> to vector<128x128xf32>
    %62 = arith.addf %58, %61 : vector<128x128xf32>
    %63 = math.tanh %62 : vector<128x128xf32>
    %c6 = arith.constant 6 : index
    %c0_45 = arith.constant 0 : index
    %c0_46 = arith.constant 0 : index
    %64 = vector.load %arg3[%c6, %c0_45, %c0_46] : memref<7x128x128xbf16, #tpu.memory_space<vmem>>, vector<1x128x128xbf16>
    %65 = vector.shape_cast %64 : vector<1x128x128xbf16> to vector<128x128xbf16>
    %66 = arith.truncf %63 : vector<128x128xf32> to vector<128x128xbf16>
    %cst_47 = arith.constant dense<0.000000e+00> : vector<128x128xf32>
    %67 = tpu.matmul %66, %65, %cst_47 {dimension_numbers = #tpu.dot_dimension_numbers<[1], [0], [0], [1], [0, 0, 1, 1], [], []>} : vector<128x128xbf16>, vector<128x128xbf16>, vector<128x128xf32> -> vector<128x128xf32>
    %c6_48 = arith.constant 6 : index
    %c0_49 = arith.constant 0 : index
    %c0_50 = arith.constant 0 : index
    %68 = vector.load %arg4[%c6_48, %c0_49, %c0_50] : memref<7x1x128xf32, #tpu.memory_space<vmem>>, vector<1x1x128xf32>
    %69 = vector.shape_cast %68 : vector<1x1x128xf32> to vector<1x128xf32>
    %70 = vector.broadcast %69 : vector<1x128xf32> to vector<128x128xf32>
    %71 = arith.addf %67, %70 : vector<128x128xf32>
    %72 = math.tanh %71 : vector<128x128xf32>
    %c0_51 = arith.constant 0 : index
    %c0_52 = arith.constant 0 : index
    %73 = vector.load %arg2[%c0_51, %c0_52] : memref<128x128xf32, #tpu.memory_space<vmem>>, vector<128x128xf32>
    %74 = arith.addf %72, %73 : vector<128x128xf32>
    %c0_53 = arith.constant 0 : index
    %c0_54 = arith.constant 0 : index
    %75 = vector.load %arg5[%c0_53, %c0_54] : memref<128x128xf32, #tpu.memory_space<vmem>>, vector<128x128xf32>
    tpu.vector_store %arg5[%c0_53, %c0_54], %74 {strides = array<i32>} : memref<128x128xf32, #tpu.memory_space<vmem>>, vector<128x128xf32>,
    return
  }
}

</mosaic_0001>

<bundles_post_ra>
// kernel: tpu_custom_call.1
= control target key start
LH: loop header
LB: loop body
LE: loop exit
PB: predicated region body
PF: predicated region fallthrough
CT: control target
= control target key end

     0   :  { %10 = vsyncpa [#allocation3], 0  ;;  %s2965_s0 = inlined_call_operand.hbm [shape: bf16[128,128], index: 0, kind: input, shape index: {}]   ;;  %s2966_s1 = inlined_call_operand.hbm [shape: bf16[128,128], index: 1, kind: input, shape index: {}]   ;;  %s2967_s2 = inlined_call_operand.hbm [shape: f32[128,128], index: 2, kind: input, shape index: {}]   ;;  %s2968_s3 = inlined_call_operand.hbm [shape: bf16[7,128,128], index: 3, kind: input, shape index: {}]   ;;  %s2969_s4 = inlined_call_operand.vmem [shape: f32[7,1,128], index: 4, kind: input, shape index: {}]   ;;  %s2970_s5 = inlined_call_operand.hbm [shape: f32[128,128], index: 5, kind: output, shape index: {}]  }
   0x1   :  { %11 = vsyncpa [#allocation6], 0 }
   0x2   :  { %12 = vsyncpa [#allocation9], 0 }
   0x3   :  { %13 = vsyncpa [#allocation4], 0  ;;  %s2817_s18 = smov [#allocation5]   ;;  %s2818_s20 = smov [#allocation2]  }
   0x4   :  { %s31_s19 = sshll.u32 %s2817_s18, 4  ;;  %s19_s21 = sshll.u32 %s2818_s20, 4  ;;  %s32_s19 = int_to_ptr.vmem [resolvable:$true] %s31_s19  ;;  %s20_s21 = int_to_ptr.vmem [resolvable:$true] %s19_s21 }
   0x5   :  { %s2717_s22 = scalar_lea.vmem %s32_s19, 1024  ;;  %p2722_p1 = scmp.lt.s32.totalorder %s32_s19, %s32_s19 }
   0x6   :  { %p2718_p0 = scmp.ne.s32.totalorder %s32_s19, %s2717_s22  ;;  %p2723_p2 = scmp.lt.s32.totalorder %s2717_s22, %s2717_s22 }
   0x8   :  { %p2724_p3 = por %p2723_p2, %p2722_p1 }
   0xa   :  { %p2725_p4 = pnand %p2724_p3, %p2718_p0 }
   0xc   :  { %2728 = shalt.err (!%p2725_p4)
}
   0xd   :  { %s2819_s23 = smov 64   ;;  %s2820_s24 = smov 4  }
   0xe   :  { %37 = dma.hbm_to_vmem [thread:$0]  %s2966_s1, 1024, %s32_s19, [#allocation6], %s2819_s23, %s2819_s23, %s2820_s24  }
   0xf   :  { %s2737_s27 = scalar_lea.vmem %s20_s21, 1024  ;;  %p2742_p6 = scmp.lt.s32.totalorder %s20_s21, %s20_s21 }
  0x10   :  { %p2738_p5 = scmp.ne.s32.totalorder %s20_s21, %s2737_s27  ;;  %p2743_p7 = scmp.lt.s32.totalorder %s2737_s27, %s2737_s27 }
  0x12   :  { %p2744_p8 = por %p2743_p7, %p2742_p6 }
  0x14   :  { %p2745_p9 = pnand %p2744_p8, %p2738_p5 }
  0x16   :  { %2748 = shalt.err (!%p2745_p9)
}
  0x17   :  { %25 = dma.hbm_to_vmem [thread:$0]  %s2965_s0, 1024, %s20_s21, [#allocation3], %s2819_s23, %s2819_s23, %s2820_s24  }
  0x18   :  { %s2821_s30 = smov [#allocation7]  }
  0x19   :  { %s43_s6 = sshll.u32 %s2821_s30, 4  ;;  %s44_s6 = int_to_ptr.vmem [resolvable:$true] %s43_s6 }
  0x1a   :  { %s2757_s7 = scalar_lea.vmem %s44_s6, 2048  ;;  %p2762_p11 = scmp.lt.s32.totalorder %s44_s6, %s44_s6 }
  0x1b   :  { %p2758_p10 = scmp.ne.s32.totalorder %s44_s6, %s2757_s7  ;;  %p2763_p12 = scmp.lt.s32.totalorder %s2757_s7, %s2757_s7 }
  0x1d   :  { %p2764_p13 = por %p2763_p12, %p2762_p11 }
  0x1f   :  { %p2765_p0 = pnand %p2764_p13, %p2758_p10 }
  0x21   :  { %2768 = shalt.err (!%p2765_p0)
}
  0x22   :  { %s2822_s1 = smov 128   ;;  %s2823_s8 = smov 8  }
  0x23   :  { %49 = dma.hbm_to_vmem [thread:$0]  %s2967_s2, 2048, %s44_s6, [#allocation6], %s2822_s1, %s2822_s1, %s2823_s8  }
  0x24   :  { %s2824_s0 = smov [#allocation8]  }
  0x25   :  { %s55_s11 = sshll.u32 %s2824_s0, 4  ;;  %s56_s11 = int_to_ptr.vmem [resolvable:$true] %s55_s11 }
  0x26   :  { %s2777_s12 = scalar_lea.vmem %s56_s11, 7168  ;;  %p2782_p2 = scmp.lt.s32.totalorder %s56_s11, %s56_s11 }
  0x27   :  { %p2778_p1 = scmp.ne.s32.totalorder %s56_s11, %s2777_s12  ;;  %p2783_p3 = scmp.lt.s32.totalorder %s2777_s12, %s2777_s12 }
  0x29   :  { %p2784_p4 = por %p2783_p3, %p2782_p2 }
  0x2b   :  { %p2785_p5 = pnand %p2784_p4, %p2778_p1 }
  0x2d   :  { %2788 = shalt.err (!%p2785_p5)
}
  0x2e   :  { %61 = dma.hbm_to_vmem [thread:$0]  %s2968_s3, 7168, %s56_s11, [#allocation9], %s2819_s23, %s2819_s23, %s2820_s24  }
  0x2f   :  { %2809 = dma.done.wait [#allocation3], 1024  }
  0x30   :  { %2810 = vsyncadd [#allocation3], 4294966272 }
  0x31   :  { %2811 = dma.done.wait [#allocation6], 3072  }
  0x32   :  { %2812 = vsyncadd [#allocation6], 4294964224 }
  0x33   :  { %2813 = dma.done.wait [#allocation9], 7168  }
  0x34   :  { %2814 = vsyncadd [#allocation9], 4294960128  ;;  %v2509_v0 = vld [vmem:[#allocation8 + $0x38] sm:$0xff]   ;;  %v2510_v1 = vld [vmem:[#allocation8 + $0x30] sm:$0xff]  }
  0x35   :  { %2180 = vmatprep.subr.bf16.mxu0 %v2509_v0  ;;  %v2511_v2 = vld [vmem:[#allocation8 + $0x28] sm:$0xff]   ;;  %v2512_v3 = vld [vmem:[#allocation8 + $0x20] sm:$0xff]   ;;  %v2513_v5 = vld [vmem:[#allocation8 + $0x18] sm:$0xff]  }
  0x36   :  { %2181 = vmatpush3.bf16.msra.mxu0 %v2509_v0  ;;  %v2517_v4 = vld [vmem:[#allocation2] sm:$0xff]   ;;  %v2514_v6 = vld [vmem:[#allocation8 + $0x10] sm:$0xff]   ;;  %v2525_v7 = vld [vmem:[#allocation8 + $0x78] sm:$0xff]  }
  0x37   :  { %2182 = vmatprep.subr.bf16.mxu0 %v2510_v1  ;;  %2196 = vmatprep.mubr.bf16.mxu0 %v2517_v4  ;;  %v2526_v8 = vld [vmem:[#allocation8 + $0x70] sm:$0xff]   ;;  %v2515_v9 = vld [vmem:[#allocation8 + $0x8] sm:$0xff]   ;;  %v2516_v10 = vld [vmem:[#allocation8] sm:$0xff]  }
  0x38   :  { %2212 = vmatprep.subr.bf16.mxu1 %v2525_v7  ;;  %v2518_v11 = vld [vmem:[#allocation2 + $0x8] sm:$0xff]   ;;  %v2519_v12 = vld [vmem:[#allocation2 + $0x10] sm:$0xff]   ;;  %v2520_v13 = vld [vmem:[#allocation2 + $0x18] sm:$0xff]  }
  0x39   :  { %2213 = vmatpush3.bf16.msra.mxu1 %v2525_v7  ;;  %v2521_v14 = vld [vmem:[#allocation2 + $0x20] sm:$0xff]   ;;  %v2522_v15 = vld [vmem:[#allocation2 + $0x28] sm:$0xff]   ;;  %v2523_v16 = vld [vmem:[#allocation2 + $0x30] sm:$0xff]  }
  0x3a   :  { %2183 = vmatpush3.bf16.msra.mxu0 %v2510_v1  ;;  %2214 = vmatprep.subr.bf16.mxu1 %v2526_v8  ;;  %v2524_v17 = vld [vmem:[#allocation2 + $0x38] sm:$0xff]   ;;  %v2527_v18 = vld [vmem:[#allocation8 + $0x68] sm:$0xff]   ;;  %v2528_v19 = vld [vmem:[#allocation8 + $0x60] sm:$0xff]  }
  0x3b   :  { %2184 = vmatprep.subr.bf16.mxu0 %v2511_v2  ;;  %v2529_v20 = vld [vmem:[#allocation8 + $0x58] sm:$0xff]   ;;  %v2530_v21 = vld [vmem:[#allocation8 + $0x50] sm:$0xff]   ;;  %v2531_v22 = vld [vmem:[#allocation8 + $0x48] sm:$0xff]  }
  0x3c   :  { %v2532_v23 = vld [vmem:[#allocation8 + $0x40] sm:$0xff]   ;;  %v2533_v24 = vld [vmem:[#allocation8 + $0xb8] sm:$0xff]   ;;  %v2534_v25 = vld [vmem:[#allocation8 + $0xb0] sm:$0xff]  }
  0x3d   :  { %2215 = vmatpush3.bf16.msra.mxu1 %v2526_v8  ;;  %v1935_v27 = vld [vmem:[%s2969_s4] ss:$0 sm:$0xff] }
  0x3e   :  { %2185 = vmatpush3.bf16.msra.mxu0 %v2511_v2  ;;  %2216 = vmatprep.subr.bf16.mxu1 %v2527_v18 }
  0x3f   :  { %2186 = vmatprep.subr.bf16.mxu0 %v2512_v3 }
  0x41   :  { %2217 = vmatpush3.bf16.msra.mxu1 %v2527_v18 }
  0x42   :  { %2187 = vmatpush3.bf16.msra.mxu0 %v2512_v3  ;;  %2218 = vmatprep.subr.bf16.mxu1 %v2528_v19 }
  0x43   :  { %2188 = vmatprep.subr.bf16.mxu0 %v2513_v5 }
  0x45   :  { %2219 = vmatpush3.bf16.msra.mxu1 %v2528_v19  ;;  %v2535_v19 = vld [vmem:[#allocation8 + $0xa8] sm:$0xff]  }
  0x46   :  { %2189 = vmatpush3.bf16.msra.mxu0 %v2513_v5  ;;  %2220 = vmatprep.subr.bf16.mxu1 %v2529_v20 }
  0x47   :  { %2190 = vmatprep.subr.bf16.mxu0 %v2514_v6 }
  0x49   :  { %2221 = vmatpush3.bf16.msra.mxu1 %v2529_v20  ;;  %v2536_v20 = vld [vmem:[#allocation8 + $0xa0] sm:$0xff]  }
  0x4a   :  { %2191 = vmatpush3.bf16.msra.mxu0 %v2514_v6  ;;  %2222 = vmatprep.subr.bf16.mxu1 %v2530_v21 }
  0x4b   :  { %2192 = vmatprep.subr.bf16.mxu0 %v2515_v9 }
  0x4d   :  { %2223 = vmatpush3.bf16.msra.mxu1 %v2530_v21  ;;  %v2537_v21 = vld [vmem:[#allocation8 + $0x98] sm:$0xff]  }
  0x4e   :  { %2193 = vmatpush3.bf16.msra.mxu0 %v2515_v9  ;;  %2224 = vmatprep.subr.bf16.mxu1 %v2531_v22 }
  0x4f   :  { %2194 = vmatprep.subr.bf16.mxu0 %v2516_v10 }
  0x51   :  { %2225 = vmatpush3.bf16.msra.mxu1 %v2531_v22  ;;  %v2538_v22 = vld [vmem:[#allocation8 + $0x90] sm:$0xff]  }
  0x52   :  { %2195 = vmatpush3.bf16.msra.mxu0 %v2516_v10  ;;  %2226 = vmatprep.subr.bf16.mxu1 %v2532_v23 }
  0x53   :  { %2244 = vmatprep.subr.bf16.mxu0 %v2533_v24 }
  0x55   :  { %2197 = vmatmul.mubr.bf16.vlgmr.msra.gmra.mxu0 %v2518_v11  ;;  %2227 = vmatpush3.bf16.msra.mxu1 %v2532_v23  ;;  %v2539_v23 = vld [vmem:[#allocation8 + $0x88] sm:$0xff]  }
  0x56   :  { %2200 = vmatprep.mubr.bf16.mxu0 %v2519_v12  ;;  %2245 = vmatpush3.bf16.msra.mxu0 %v2533_v24  ;;  %v2540_v24 = vld [vmem:[#allocation8 + $0x80] sm:$0xff]  }
  0x57   :  { %2246 = vmatprep.subr.bf16.mxu0 %v2534_v25 }
  0x5a   :  { %2247 = vmatpush3.bf16.msra.mxu0 %v2534_v25 }
  0x5b   :  { %2248 = vmatprep.subr.bf16.mxu0 %v2535_v19 }
  0x5d   :  { %2201 = vmatmul.mubr.bf16.gmra.mxu0 %v2520_v13 }
  0x5e   :  { %2204 = vmatprep.mubr.bf16.mxu0 %v2521_v14  ;;  %2249 = vmatpush3.bf16.msra.mxu0 %v2535_v19  ;;  %v2549_v19 = vld [vmem:[#allocation8 + $0xf8] sm:$0xff]  }
  0x5f   :  { %2250 = vmatprep.subr.bf16.mxu0 %v2536_v20 }
  0x62   :  { %2251 = vmatpush3.bf16.msra.mxu0 %v2536_v20  ;;  %v2550_v20 = vld [vmem:[#allocation8 + $0xf0] sm:$0xff]  }
  0x63   :  { %2252 = vmatprep.subr.bf16.mxu0 %v2537_v21 }
  0x65   :  { %2205 = vmatmul.mubr.bf16.gmra.mxu0 %v2522_v15 }
  0x66   :  { %2208 = vmatprep.mubr.bf16.mxu0 %v2523_v16  ;;  %2253 = vmatpush3.bf16.msra.mxu0 %v2537_v21  ;;  %v2551_v21 = vld [vmem:[#allocation8 + $0xe8] sm:$0xff]  }
  0x67   :  { %2254 = vmatprep.subr.bf16.mxu0 %v2538_v22 }
  0x6a   :  { %2255 = vmatpush3.bf16.msra.mxu0 %v2538_v22  ;;  %v2552_v22 = vld [vmem:[#allocation8 + $0xe0] sm:$0xff]  }
  0x6b   :  { %2256 = vmatprep.subr.bf16.mxu0 %v2539_v23 }
  0x6d   :  { %2209 = vmatmul.mubr.bf16.gmra.mxu0 %v2524_v17 }
  0x6e   :  { %2257 = vmatpush3.bf16.msra.mxu0 %v2539_v23  ;;  %v2553_v23 = vld [vmem:[#allocation8 + $0xd8] sm:$0xff]  }
  0x6f   :  { %2258 = vmatprep.subr.bf16.mxu0 %v2540_v24 }
  0x72   :  { %2259 = vmatpush3.bf16.msra.mxu0 %v2540_v24 }
  0x73   :  { %2308 = vmatprep.subr.bf16.mxu0 %v2549_v19 }
 0x115   :  { %v2198_v26 = vpop.f32.mrf.mxu0 }
 0x116   :  { %v255_v32 = vadd.f32 %v2198_v26, %v1935_v27  ;;  %v1953_v26 = vld [vmem:[%s2969_s4 + $0x1] ss:$0 sm:$0xff] }
 0x117   :  { %v246_v28 = vpop.f32.mrf.mxu0 }
 0x118   :  { %v247_v29 = vadd.f32 %v1935_v27, %v246_v28 }
 0x119   :  { %v2199_v30 = vpop.f32.mrf.mxu0 }
 0x11a   :  { %v258_v31 = vadd.f32 %v2199_v30, %v1935_v27  ;;  %2581 = vtanh.f32 %v247_v29 }
 0x11b   :  { %v249_v33 = vpop.f32.mrf.mxu0 }
 0x11c   :  { %v250_v34 = vadd.f32 %v1935_v27, %v249_v33  ;;  %2583 = vtanh.f32 %v258_v31 }
 0x11d   :  { %v2202_v35 = vpop.f32.mrf.mxu0 }
 0x11e   :  { %2585 = vtanh.f32 %v250_v34  ;;  %v271_v40 = vadd.f32 %v2202_v35, %v1935_v27 }
 0x11f   :  { %2587 = vtanh.f32 %v255_v32  ;;  %v262_v36 = vpop.f32.mrf.mxu0 }
 0x120   :  { %v263_v37 = vadd.f32 %v1935_v27, %v262_v36 }
 0x121   :  { %v2203_v38 = vpop.f32.mrf.mxu0 }
 0x122   :  { %v274_v39 = vadd.f32 %v2203_v38, %v1935_v27  ;;  %2589 = vtanh.f32 %v263_v37 }
 0x123   :  { %v265_v41 = vpop.f32.mrf.mxu0 }
 0x124   :  { %v266_v42 = vadd.f32 %v1935_v27, %v265_v41  ;;  %2591 = vtanh.f32 %v274_v39 }
 0x125   :  { %v2206_v43 = vpop.f32.mrf.mxu0 }
 0x126   :  { %2593 = vtanh.f32 %v266_v42  ;;  %v287_v51 = vadd.f32 %v2206_v43, %v1935_v27 }
 0x127   :  { %2595 = vtanh.f32 %v271_v40  ;;  %v278_v44 = vpop.f32.mrf.mxu0  ;;  %v2582_v46 = vpop.eup %2581 }
 0x128   :  { %v279_v45 = vadd.f32 %v1935_v27, %v278_v44 }
 0x129   :  { %v2207_v47 = vpop.f32.mrf.mxu0  ;;  %v2584_v48 = vpop.eup %2583 }
 0x12a   :  { %v290_v49 = vadd.f32 %v2207_v47, %v1935_v27  ;;  %2597 = vtanh.f32 %v279_v45 }
 0x12b   :  { %v2586_v50 = vpop.eup %2585  ;;  %v281_v52 = vpop.f32.mrf.mxu0 }
 0x12c   :  { %v2588_v53 = vpop.eup %2587  ;;  %v282_v54 = vadd.f32 %v1935_v27, %v281_v52  ;;  %v342_v55 = vpack.c.bf16 %v2586_v50, %v2582_v46  ;;  %2599 = vtanh.f32 %v290_v49 }
 0x12d   :  { %v2210_v56 = vpop.f32.mrf.mxu0  ;;  %v343_v57 = vpack.c.bf16 %v2584_v48, %v2588_v53 }
 0x12e   :  { %2601 = vtanh.f32 %v282_v54  ;;  %2228 = vmatprep.mubr.bf16.mxu1 %v342_v55  ;;  %v303_v1 = vadd.f32 %v2210_v56, %v1935_v27 }
 0x12f   :  { %2603 = vtanh.f32 %v287_v51  ;;  %v294_v58 = vpop.f32.mrf.mxu0  ;;  %2229 = vmatmul.mubr.bf16.vlgmr.msra.gmra.mxu1 %v343_v57  ;;  %v2590_v60 = vpop.eup %2589 }
 0x130   :  { %v295_v59 = vadd.f32 %v1935_v27, %v294_v58 }
 0x131   :  { %v2211_v61 = vpop.f32.mrf.mxu0  ;;  %v2592_v62 = vpop.eup %2591 }
 0x132   :  { %v306_v63 = vadd.f32 %v2211_v61, %v1935_v27  ;;  %2605 = vtanh.f32 %v295_v59 }
 0x133   :  { %v2594_v0 = vpop.eup %2593  ;;  %v297_v2 = vpop.f32.mrf.mxu0 }
 0x134   :  { %v2596_v3 = vpop.eup %2595  ;;  %v298_v4 = vadd.f32 %v1935_v27, %v297_v2  ;;  %v344_v5 = vpack.c.bf16 %v2594_v0, %v2590_v60  ;;  %2607 = vtanh.f32 %v306_v63 }
 0x135   :  { %v345_v6 = vpack.c.bf16 %v2592_v62, %v2596_v3 }
 0x136   :  { %2609 = vtanh.f32 %v298_v4  ;;  %2232 = vmatprep.mubr.bf16.mxu1 %v344_v5 }
 0x137   :  { %2611 = vtanh.f32 %v303_v1  ;;  %2233 = vmatmul.mubr.bf16.gmra.mxu1 %v345_v6  ;;  %v2598_v7 = vpop.eup %2597 }
 0x139   :  { %v2600_v8 = vpop.eup %2599 }
 0x13b   :  { %v2602_v9 = vpop.eup %2601 }
 0x13c   :  { %v2604_v10 = vpop.eup %2603  ;;  %v346_v11 = vpack.c.bf16 %v2602_v9, %v2598_v7 }
 0x13d   :  { %v347_v12 = vpack.c.bf16 %v2600_v8, %v2604_v10 }
 0x13e   :  { %2236 = vmatprep.mubr.bf16.mxu1 %v346_v11 }
 0x13f   :  { %2237 = vmatmul.mubr.bf16.gmra.mxu1 %v347_v12  ;;  %v2606_v13 = vpop.eup %2605 }
 0x141   :  { %v2608_v14 = vpop.eup %2607 }
 0x143   :  { %v2610_v15 = vpop.eup %2609 }
 0x144   :  { %v2612_v16 = vpop.eup %2611  ;;  %v348_v17 = vpack.c.bf16 %v2610_v15, %v2606_v13 }
 0x145   :  { %v349_v18 = vpack.c.bf16 %v2608_v14, %v2612_v16 }
 0x146   :  { %2240 = vmatprep.mubr.bf16.mxu1 %v348_v17 }
 0x147   :  { %2241 = vmatmul.mubr.bf16.gmra.mxu1 %v349_v18  ;;  %v2886_v18 = vld [vmem:[#allocation5] sm:$0xff]  }
 0x148   :  { %2292 = vmatprep.mubr.bf16.mxu1 %v2886_v18 }
 0x1ef   :  { %v2230_v25 = vpop.f32.mrf.mxu1 }
 0x1f0   :  { %v449_v31 = vadd.f32 %v2230_v25, %v1953_v26 }
 0x1f1   :  { %v440_v27 = vpop.f32.mrf.mxu1 }
 0x1f2   :  { %v441_v28 = vadd.f32 %v1953_v26, %v440_v27 }
 0x1f3   :  { %v2231_v29 = vpop.f32.mrf.mxu1 }
 0x1f4   :  { %v452_v30 = vadd.f32 %v2231_v29, %v1953_v26  ;;  %2613 = vtanh.f32 %v441_v28 }
 0x1f5   :  { %v443_v32 = vpop.f32.mrf.mxu1 }
 0x1f6   :  { %v444_v33 = vadd.f32 %v1953_v26, %v443_v32  ;;  %2615 = vtanh.f32 %v452_v30 }
 0x1f7   :  { %v2234_v34 = vpop.f32.mrf.mxu1 }
 0x1f8   :  { %2617 = vtanh.f32 %v444_v33  ;;  %v465_v39 = vadd.f32 %v2234_v34, %v1953_v26 }
 0x1f9   :  { %2619 = vtanh.f32 %v449_v31  ;;  %v456_v35 = vpop.f32.mrf.mxu1 }
 0x1fa   :  { %v457_v36 = vadd.f32 %v1953_v26, %v456_v35 }
 0x1fb   :  { %v2235_v37 = vpop.f32.mrf.mxu1 }
 0x1fc   :  { %v468_v38 = vadd.f32 %v2235_v37, %v1953_v26  ;;  %2621 = vtanh.f32 %v457_v36 }
 0x1fd   :  { %v459_v40 = vpop.f32.mrf.mxu1 }
 0x1fe   :  { %v460_v41 = vadd.f32 %v1953_v26, %v459_v40  ;;  %2623 = vtanh.f32 %v468_v38 }
 0x1ff   :  { %v2238_v42 = vpop.f32.mrf.mxu1 }
 0x200   :  { %2625 = vtanh.f32 %v460_v41  ;;  %v481_v50 = vadd.f32 %v2238_v42, %v1953_v26 }
 0x201   :  { %2627 = vtanh.f32 %v465_v39  ;;  %v472_v43 = vpop.f32.mrf.mxu1  ;;  %v2614_v45 = vpop.eup %2613 }
 0x202   :  { %v473_v44 = vadd.f32 %v1953_v26, %v472_v43 }
 0x203   :  { %v2239_v46 = vpop.f32.mrf.mxu1  ;;  %v2616_v47 = vpop.eup %2615 }
 0x204   :  { %v484_v48 = vadd.f32 %v2239_v46, %v1953_v26  ;;  %2629 = vtanh.f32 %v473_v44 }
 0x205   :  { %v2618_v49 = vpop.eup %2617  ;;  %v475_v51 = vpop.f32.mrf.mxu1 }
 0x206   :  { %v2620_v52 = vpop.eup %2619  ;;  %v476_v53 = vadd.f32 %v1953_v26, %v475_v51  ;;  %v552_v54 = vpack.c.bf16 %v2618_v49, %v2614_v45  ;;  %2631 = vtanh.f32 %v484_v48  ;;  %v2889_v48 = vld [vmem:[#allocation5 + $0x8] sm:$0xff]   ;;  %v2891_v49 = vld [vmem:[#allocation5 + $0x10] sm:$0xff]   ;;  %v2897_v51 = vld [vmem:[#allocation5 + $0x20] sm:$0xff]  }
 0x207   :  { %v2242_v55 = vpop.f32.mrf.mxu1  ;;  %v553_v56 = vpack.c.bf16 %v2616_v47, %v2620_v52  ;;  %v2901_v52 = vld [vmem:[#allocation5 + $0x28] sm:$0xff]  }
 0x208   :  { %2633 = vtanh.f32 %v476_v53  ;;  %2260 = vmatprep.mubr.bf16.mxu0 %v552_v54  ;;  %v497_v0 = vadd.f32 %v2242_v55, %v1953_v26  ;;  %v2903_v53 = vld [vmem:[#allocation5 + $0x30] sm:$0xff]   ;;  %v2907_v54 = vld [vmem:[#allocation5 + $0x38] sm:$0xff]  }
 0x209   :  { %2635 = vtanh.f32 %v481_v50  ;;  %v488_v57 = vpop.f32.mrf.mxu1  ;;  %2261 = vmatmul.mubr.bf16.vlgmr.msra.gmra.mxu0 %v553_v56  ;;  %v2622_v59 = vpop.eup %2621  ;;  %v2895_v50 = vld [vmem:[#allocation5 + $0x18] sm:$0xff]   ;;  %v2554_v55 = vld [vmem:[#allocation8 + $0xd0] sm:$0xff]   ;;  %v2555_v56 = vld [vmem:[#allocation8 + $0xc8] sm:$0xff]  }
 0x20a   :  { %v489_v58 = vadd.f32 %v1953_v26, %v488_v57  ;;  %2309 = vmatpush3.bf16.msra.mxu0 %v2549_v19  ;;  %v2556_v57 = vld [vmem:[#allocation8 + $0xc0] sm:$0xff]  }
 0x20b   :  { %v2243_v60 = vpop.f32.mrf.mxu1  ;;  %v2624_v61 = vpop.eup %2623  ;;  %2310 = vmatprep.subr.bf16.mxu0 %v2550_v20 }
 0x20c   :  { %v500_v62 = vadd.f32 %v2243_v60, %v1953_v26  ;;  %2637 = vtanh.f32 %v489_v58  ;;  %v1971_v60 = vld [vmem:[%s2969_s4 + $0x2] ss:$0 sm:$0xff] }
 0x20d   :  { %v2626_v63 = vpop.eup %2625  ;;  %v491_v1 = vpop.f32.mrf.mxu1 }
 0x20e   :  { %v2628_v2 = vpop.eup %2627  ;;  %v492_v3 = vadd.f32 %v1953_v26, %v491_v1  ;;  %v554_v4 = vpack.c.bf16 %v2626_v63, %v2622_v59  ;;  %2639 = vtanh.f32 %v500_v62  ;;  %2311 = vmatpush3.bf16.msra.mxu0 %v2550_v20 }
 0x20f   :  { %v555_v5 = vpack.c.bf16 %v2624_v61, %v2628_v2  ;;  %2312 = vmatprep.subr.bf16.mxu0 %v2551_v21 }
 0x210   :  { %2641 = vtanh.f32 %v492_v3  ;;  %2264 = vmatprep.mubr.bf16.mxu0 %v554_v4 }
 0x211   :  { %2643 = vtanh.f32 %v497_v0  ;;  %2265 = vmatmul.mubr.bf16.gmra.mxu0 %v555_v5  ;;  %v2630_v6 = vpop.eup %2629 }
 0x212   :  { %2313 = vmatpush3.bf16.msra.mxu0 %v2551_v21 }
 0x213   :  { %v2632_v7 = vpop.eup %2631  ;;  %2314 = vmatprep.subr.bf16.mxu0 %v2552_v22 }
 0x215   :  { %v2634_v8 = vpop.eup %2633 }
 0x216   :  { %v2636_v9 = vpop.eup %2635  ;;  %v556_v10 = vpack.c.bf16 %v2634_v8, %v2630_v6  ;;  %2315 = vmatpush3.bf16.msra.mxu0 %v2552_v22 }
 0x217   :  { %v557_v11 = vpack.c.bf16 %v2632_v7, %v2636_v9  ;;  %2316 = vmatprep.subr.bf16.mxu0 %v2553_v23 }
 0x218   :  { %2268 = vmatprep.mubr.bf16.mxu0 %v556_v10 }
 0x219   :  { %2269 = vmatmul.mubr.bf16.gmra.mxu0 %v557_v11  ;;  %v2638_v12 = vpop.eup %2637 }
 0x21a   :  { %2317 = vmatpush3.bf16.msra.mxu0 %v2553_v23 }
 0x21b   :  { %v2640_v13 = vpop.eup %2639  ;;  %2318 = vmatprep.subr.bf16.mxu0 %v2554_v55 }
 0x21d   :  { %v2642_v14 = vpop.eup %2641 }
 0x21e   :  { %v2644_v15 = vpop.eup %2643  ;;  %v558_v16 = vpack.c.bf16 %v2642_v14, %v2638_v12  ;;  %2319 = vmatpush3.bf16.msra.mxu0 %v2554_v55 }
 0x21f   :  { %v559_v17 = vpack.c.bf16 %v2640_v13, %v2644_v15  ;;  %2320 = vmatprep.subr.bf16.mxu0 %v2555_v56 }
 0x220   :  { %2272 = vmatprep.mubr.bf16.mxu0 %v558_v16 }
 0x221   :  { %2273 = vmatmul.mubr.bf16.gmra.mxu0 %v559_v17 }
 0x222   :  { %2321 = vmatpush3.bf16.msra.mxu0 %v2555_v56 }
 0x223   :  { %2322 = vmatprep.subr.bf16.mxu0 %v2556_v57 }
 0x226   :  { %2323 = vmatpush3.bf16.msra.mxu0 %v2556_v57 }
 0x2c9   :  { %v2262_v24 = vpop.f32.mrf.mxu0 }
 0x2cb   :  { %v642_v25 = vpop.f32.mrf.mxu0 }
 0x2cd   :  { %v2263_v26 = vpop.f32.mrf.mxu0 }
 0x2ce   :  { %v706_v46 = vpack.c.bf16 %v2263_v26, %v2262_v24 }
 0x2cf   :  { %v645_v27 = vpop.f32.mrf.mxu0 }
 0x2d0   :  { %v705_v47 = vpack.c.bf16 %v645_v27, %v642_v25 }
 0x2d1   :  { %v2266_v28 = vpop.f32.mrf.mxu0 }
 0x2d3   :  { %v658_v29 = vpop.f32.mrf.mxu0 }
 0x2d5   :  { %v2267_v30 = vpop.f32.mrf.mxu0 }
 0x2d6   :  { %v708_v44 = vpack.c.bf16 %v2267_v30, %v2266_v28 }
 0x2d7   :  { %v661_v31 = vpop.f32.mrf.mxu0 }
 0x2d8   :  { %v707_v45 = vpack.c.bf16 %v661_v31, %v658_v29 }
 0x2d9   :  { %v2270_v32 = vpop.f32.mrf.mxu0 }
 0x2db   :  { %v674_v33 = vpop.f32.mrf.mxu0 }
 0x2dd   :  { %v2271_v34 = vpop.f32.mrf.mxu0 }
 0x2de   :  { %v710_v42 = vpack.c.bf16 %v2271_v34, %v2270_v32 }
 0x2df   :  { %v677_v35 = vpop.f32.mrf.mxu0 }
 0x2e0   :  { %v709_v43 = vpack.c.bf16 %v677_v35, %v674_v33 }
 0x2e1   :  { %v2274_v36 = vpop.f32.mrf.mxu0 }
 0x2e3   :  { %v690_v37 = vpop.f32.mrf.mxu0 }
 0x2e5   :  { %v2275_v38 = vpop.f32.mrf.mxu0 }
 0x2e6   :  { %v712_v39 = vpack.c.bf16 %v2275_v38, %v2274_v36 }
 0x2e7   :  { %v693_v40 = vpop.f32.mrf.mxu0 }
 0x2e8   :  { %v711_v41 = vpack.c.bf16 %v693_v40, %v690_v37  ;;  %2276 = vmatprep.subr.bf16.mxu1 %v712_v39 }
 0x2e9   :  { %2277 = vmatpush3.bf16.msra.mxu1 %v712_v39 }
 0x2ea   :  { %2278 = vmatprep.subr.bf16.mxu1 %v711_v41 }
 0x2ed   :  { %2279 = vmatpush3.bf16.msra.mxu1 %v711_v41 }
 0x2ee   :  { %2280 = vmatprep.subr.bf16.mxu1 %v710_v42 }
 0x2f1   :  { %2281 = vmatpush3.bf16.msra.mxu1 %v710_v42 }
 0x2f2   :  { %2282 = vmatprep.subr.bf16.mxu1 %v709_v43 }
 0x2f5   :  { %2283 = vmatpush3.bf16.msra.mxu1 %v709_v43 }
 0x2f6   :  { %2284 = vmatprep.subr.bf16.mxu1 %v708_v44 }
 0x2f9   :  { %2285 = vmatpush3.bf16.msra.mxu1 %v708_v44 }
 0x2fa   :  { %2286 = vmatprep.subr.bf16.mxu1 %v707_v45 }
 0x2fd   :  { %2287 = vmatpush3.bf16.msra.mxu1 %v707_v45 }
 0x2fe   :  { %2288 = vmatprep.subr.bf16.mxu1 %v706_v46 }
 0x301   :  { %2289 = vmatpush3.bf16.msra.mxu1 %v706_v46 }
 0x302   :  { %2290 = vmatprep.subr.bf16.mxu1 %v705_v47 }
 0x305   :  { %2291 = vmatpush3.bf16.msra.mxu1 %v705_v47 }
 0x308   :  { %2293 = vmatmul.mubr.bf16.vlgmr.msra.gmra.mxu1 %v2889_v48 }
 0x309   :  { %2296 = vmatprep.mubr.bf16.mxu1 %v2891_v49 }
 0x310   :  { %2297 = vmatmul.mubr.bf16.gmra.mxu1 %v2895_v50 }
 0x311   :  { %2300 = vmatprep.mubr.bf16.mxu1 %v2897_v51 }
 0x318   :  { %2301 = vmatmul.mubr.bf16.gmra.mxu1 %v2901_v52 }
 0x319   :  { %2304 = vmatprep.mubr.bf16.mxu1 %v2903_v53 }
 0x320   :  { %2305 = vmatmul.mubr.bf16.gmra.mxu1 %v2907_v54 }
 0x321   :  { %2356 = vmatprep.mubr.bf16.mxu1 %v2886_v18 }
 0x3c8   :  { %v2294_v58 = vpop.f32.mrf.mxu1 }
 0x3c9   :  { %v812_v0 = vadd.f32 %v2294_v58, %v1971_v60 }
 0x3ca   :  { %v803_v59 = vpop.f32.mrf.mxu1 }
 0x3cb   :  { %v804_v62 = vadd.f32 %v1971_v60, %v803_v59  ;;  %v868_v7 = vmax.f32 %v812_v0, 0.0  ;;  %v2557_v59 = vld [vmem:[#allocation8 + $0x138] sm:$0xff]  }
 0x3cc   :  { %v2295_v61 = vpop.f32.mrf.mxu1  ;;  %2372 = vmatprep.subr.bf16.mxu0 %v2557_v59 }
 0x3cd   :  { %v815_v63 = vadd.f32 %v2295_v61, %v1971_v60  ;;  %v866_v5 = vmax.f32 %v804_v62, 0.0  ;;  %v2558_v61 = vld [vmem:[#allocation8 + $0x130] sm:$0xff]   ;;  %v2559_v62 = vld [vmem:[#allocation8 + $0x128] sm:$0xff]  }
 0x3ce   :  { %v806_v1 = vpop.f32.mrf.mxu1 }
 0x3cf   :  { %v807_v2 = vadd.f32 %v1971_v60, %v806_v1  ;;  %v869_v3 = vmax.f32 %v815_v63, 0.0  ;;  %v2560_v63 = vld [vmem:[#allocation8 + $0x120] sm:$0xff]  }
 0x3d0   :  { %v2298_v4 = vpop.f32.mrf.mxu1 }
 0x3d1   :  { %v867_v6 = vmax.f32 %v807_v2, 0.0  ;;  %v900_v10 = vpack.c.bf16 %v869_v3, %v868_v7  ;;  %v828_v14 = vadd.f32 %v2298_v4, %v1971_v60 }
 0x3d2   :  { %v819_v8 = vpop.f32.mrf.mxu1 }
 0x3d3   :  { %v899_v9 = vpack.c.bf16 %v867_v6, %v866_v5  ;;  %v820_v12 = vadd.f32 %v1971_v60, %v819_v8  ;;  %v872_v22 = vmax.f32 %v828_v14, 0.0 }
 0x3d4   :  { %v2299_v11 = vpop.f32.mrf.mxu1 }
 0x3d5   :  { %v831_v13 = vadd.f32 %v2299_v11, %v1971_v60  ;;  %2324 = vmatprep.mubr.bf16.mxu0 %v899_v9  ;;  %v870_v20 = vmax.f32 %v820_v12, 0.0 }
 0x3d6   :  { %v822_v15 = vpop.f32.mrf.mxu1  ;;  %2325 = vmatmul.mubr.bf16.vlgmr.msra.gmra.mxu0 %v900_v10 }
 0x3d7   :  { %v823_v16 = vadd.f32 %v1971_v60, %v822_v15  ;;  %v873_v17 = vmax.f32 %v831_v13, 0.0  ;;  %2373 = vmatpush3.bf16.msra.mxu0 %v2557_v59 }
 0x3d8   :  { %v2302_v19 = vpop.f32.mrf.mxu1  ;;  %2374 = vmatprep.subr.bf16.mxu0 %v2558_v61 }
 0x3d9   :  { %v871_v21 = vmax.f32 %v823_v16, 0.0  ;;  %v902_v25 = vpack.c.bf16 %v873_v17, %v872_v22  ;;  %v844_v29 = vadd.f32 %v2302_v19, %v1971_v60 }
 0x3da   :  { %v835_v23 = vpop.f32.mrf.mxu1 }
 0x3db   :  { %v901_v24 = vpack.c.bf16 %v871_v21, %v870_v20  ;;  %v836_v27 = vadd.f32 %v1971_v60, %v835_v23  ;;  %v876_v36 = vmax.f32 %v844_v29, 0.0  ;;  %2375 = vmatpush3.bf16.msra.mxu0 %v2558_v61 }
 0x3dc   :  { %v2303_v26 = vpop.f32.mrf.mxu1  ;;  %2376 = vmatprep.subr.bf16.mxu0 %v2559_v62 }
 0x3dd   :  { %v847_v28 = vadd.f32 %v2303_v26, %v1971_v60  ;;  %2328 = vmatprep.mubr.bf16.mxu0 %v901_v24  ;;  %v874_v34 = vmax.f32 %v836_v27, 0.0  ;;  %v2563_v26 = vld [vmem:[#allocation8 + $0x108] sm:$0xff]   ;;  %v2564_v27 = vld [vmem:[#allocation8 + $0x100] sm:$0xff]  }
 0x3de   :  { %v838_v30 = vpop.f32.mrf.mxu1  ;;  %2329 = vmatmul.mubr.bf16.gmra.mxu0 %v902_v25  ;;  %v2562_v25 = vld [vmem:[#allocation8 + $0x110] sm:$0xff]  }
 0x3df   :  { %v839_v31 = vadd.f32 %v1971_v60, %v838_v30  ;;  %v877_v32 = vmax.f32 %v847_v28, 0.0  ;;  %2377 = vmatpush3.bf16.msra.mxu0 %v2559_v62  ;;  %v1989_v30 = vld [vmem:[%s2969_s4 + $0x3] ss:$0 sm:$0xff] }
 0x3e0   :  { %v2306_v33 = vpop.f32.mrf.mxu1  ;;  %2378 = vmatprep.subr.bf16.mxu0 %v2560_v63 }
 0x3e1   :  { %v875_v35 = vmax.f32 %v839_v31, 0.0  ;;  %v904_v39 = vpack.c.bf16 %v877_v32, %v876_v36  ;;  %v860_v43 = vadd.f32 %v2306_v33, %v1971_v60 }
 0x3e2   :  { %v851_v37 = vpop.f32.mrf.mxu1 }
 0x3e3   :  { %v903_v38 = vpack.c.bf16 %v875_v35, %v874_v34  ;;  %v852_v41 = vadd.f32 %v1971_v60, %v851_v37  ;;  %v880_v56 = vmax.f32 %v860_v43, 0.0  ;;  %2379 = vmatpush3.bf16.msra.mxu0 %v2560_v63 }
 0x3e4   :  { %v2307_v40 = vpop.f32.mrf.mxu1 }
 0x3e5   :  { %v863_v42 = vadd.f32 %v2307_v40, %v1971_v60  ;;  %2332 = vmatprep.mubr.bf16.mxu0 %v903_v38  ;;  %v878_v47 = vmax.f32 %v852_v41, 0.0 }
 0x3e6   :  { %v854_v44 = vpop.f32.mrf.mxu1  ;;  %2333 = vmatmul.mubr.bf16.gmra.mxu0 %v904_v39 }
 0x3e7   :  { %v855_v45 = vadd.f32 %v1971_v60, %v854_v44  ;;  %v881_v46 = vmax.f32 %v863_v42, 0.0  ;;  %v2561_v60 = vld [vmem:[#allocation8 + $0x118] sm:$0xff]  }
 0x3e8   :  { %2380 = vmatprep.subr.bf16.mxu0 %v2561_v60 }
 0x3e9   :  { %v879_v55 = vmax.f32 %v855_v45, 0.0  ;;  %v906_v58 = vpack.c.bf16 %v881_v46, %v880_v56  ;;  %2381 = vmatpush3.bf16.msra.mxu0 %v2561_v60 }
 0x3ea   :  { %2382 = vmatprep.subr.bf16.mxu0 %v2562_v25 }
 0x3eb   :  { %v905_v57 = vpack.c.bf16 %v879_v55, %v878_v47 }
 0x3ed   :  { %2336 = vmatprep.mubr.bf16.mxu0 %v905_v57  ;;  %2383 = vmatpush3.bf16.msra.mxu0 %v2562_v25 }
 0x3ee   :  { %2337 = vmatmul.mubr.bf16.gmra.mxu0 %v906_v58  ;;  %2384 = vmatprep.subr.bf16.mxu0 %v2563_v26 }
 0x3f1   :  { %2385 = vmatpush3.bf16.msra.mxu0 %v2563_v26 }
 0x3f2   :  { %2386 = vmatprep.subr.bf16.mxu0 %v2564_v27 }
 0x3f5   :  { %2387 = vmatpush3.bf16.msra.mxu0 %v2564_v27 }
 0x496   :  { %v2326_v0 = vpop.f32.mrf.mxu0 }
 0x498   :  { %v989_v1 = vpop.f32.mrf.mxu0 }
 0x49a   :  { %v2327_v2 = vpop.f32.mrf.mxu0 }
 0x49b   :  { %v1053_v23 = vpack.c.bf16 %v2327_v2, %v2326_v0 }
 0x49c   :  { %v992_v3 = vpop.f32.mrf.mxu0 }
 0x49d   :  { %v1052_v24 = vpack.c.bf16 %v992_v3, %v989_v1 }
 0x49e   :  { %v2330_v4 = vpop.f32.mrf.mxu0 }
 0x4a0   :  { %v1005_v5 = vpop.f32.mrf.mxu0 }
 0x4a2   :  { %v2331_v6 = vpop.f32.mrf.mxu0 }
 0x4a3   :  { %v1055_v21 = vpack.c.bf16 %v2331_v6, %v2330_v4 }
 0x4a4   :  { %v1008_v7 = vpop.f32.mrf.mxu0 }
 0x4a5   :  { %v1054_v22 = vpack.c.bf16 %v1008_v7, %v1005_v5 }
 0x4a6   :  { %v2334_v8 = vpop.f32.mrf.mxu0 }
 0x4a8   :  { %v1021_v9 = vpop.f32.mrf.mxu0 }
 0x4aa   :  { %v2335_v10 = vpop.f32.mrf.mxu0 }
 0x4ab   :  { %v1057_v19 = vpack.c.bf16 %v2335_v10, %v2334_v8 }
 0x4ac   :  { %v1024_v11 = vpop.f32.mrf.mxu0 }
 0x4ad   :  { %v1056_v20 = vpack.c.bf16 %v1024_v11, %v1021_v9 }
 0x4ae   :  { %v2338_v12 = vpop.f32.mrf.mxu0 }
 0x4b0   :  { %v1037_v13 = vpop.f32.mrf.mxu0 }
 0x4b2   :  { %v2339_v14 = vpop.f32.mrf.mxu0 }
 0x4b3   :  { %v1059_v15 = vpack.c.bf16 %v2339_v14, %v2338_v12 }
 0x4b4   :  { %v1040_v16 = vpop.f32.mrf.mxu0 }
 0x4b5   :  { %v1058_v17 = vpack.c.bf16 %v1040_v16, %v1037_v13  ;;  %2340 = vmatprep.subr.bf16.mxu1 %v1059_v15 }
 0x4b6   :  { %2341 = vmatpush3.bf16.msra.mxu1 %v1059_v15 }
 0x4b7   :  { %2342 = vmatprep.subr.bf16.mxu1 %v1058_v17 }
 0x4ba   :  { %2343 = vmatpush3.bf16.msra.mxu1 %v1058_v17 }
 0x4bb   :  { %2344 = vmatprep.subr.bf16.mxu1 %v1057_v19 }
 0x4be   :  { %2345 = vmatpush3.bf16.msra.mxu1 %v1057_v19 }
 0x4bf   :  { %2346 = vmatprep.subr.bf16.mxu1 %v1056_v20 }
 0x4c2   :  { %2347 = vmatpush3.bf16.msra.mxu1 %v1056_v20 }
 0x4c3   :  { %2348 = vmatprep.subr.bf16.mxu1 %v1055_v21 }
 0x4c6   :  { %2349 = vmatpush3.bf16.msra.mxu1 %v1055_v21 }
 0x4c7   :  { %2350 = vmatprep.subr.bf16.mxu1 %v1054_v22 }
 0x4ca   :  { %2351 = vmatpush3.bf16.msra.mxu1 %v1054_v22 }
 0x4cb   :  { %2352 = vmatprep.subr.bf16.mxu1 %v1053_v23 }
 0x4ce   :  { %2353 = vmatpush3.bf16.msra.mxu1 %v1053_v23 }
 0x4cf   :  { %2354 = vmatprep.subr.bf16.mxu1 %v1052_v24 }
 0x4d2   :  { %2355 = vmatpush3.bf16.msra.mxu1 %v1052_v24 }
 0x4d5   :  { %2357 = vmatmul.mubr.bf16.vlgmr.msra.gmra.mxu1 %v2889_v48 }
 0x4d6   :  { %2360 = vmatprep.mubr.bf16.mxu1 %v2891_v49 }
 0x4dd   :  { %2361 = vmatmul.mubr.bf16.gmra.mxu1 %v2895_v50 }
 0x4de   :  { %2364 = vmatprep.mubr.bf16.mxu1 %v2897_v51 }
 0x4e5   :  { %2365 = vmatmul.mubr.bf16.gmra.mxu1 %v2901_v52 }
 0x4e6   :  { %2368 = vmatprep.mubr.bf16.mxu1 %v2903_v53 }
 0x4ed   :  { %2369 = vmatmul.mubr.bf16.gmra.mxu1 %v2907_v54 }
 0x4ee   :  { %2420 = vmatprep.mubr.bf16.mxu1 %v2886_v18 }
 0x595   :  { %v2358_v28 = vpop.f32.mrf.mxu1 }
 0x596   :  { %v1111_v34 = vadd.f32 %v2358_v28, %v1989_v30  ;;  %v2565_v28 = vld [vmem:[#allocation8 + $0x178] sm:$0xff]  }
 0x597   :  { %v1102_v29 = vpop.f32.mrf.mxu1  ;;  %2436 = vmatprep.subr.bf16.mxu0 %v2565_v28 }
 0x598   :  { %v1103_v32 = vadd.f32 %v1989_v30, %v1102_v29  ;;  %v1167_v40 = vmax.f32 %v1111_v34, 0.0  ;;  %v2566_v29 = vld [vmem:[#allocation8 + $0x170] sm:$0xff]  }
 0x599   :  { %v2359_v31 = vpop.f32.mrf.mxu1 }
 0x59a   :  { %v1114_v33 = vadd.f32 %v2359_v31, %v1989_v30  ;;  %v1165_v38 = vmax.f32 %v1103_v32, 0.0  ;;  %v2567_v31 = vld [vmem:[#allocation8 + $0x168] sm:$0xff]   ;;  %v2568_v32 = vld [vmem:[#allocation8 + $0x160] sm:$0xff]  }
 0x59b   :  { %v1105_v18 = vpop.f32.mrf.mxu1 }
 0x59c   :  { %v1106_v35 = vadd.f32 %v1989_v30, %v1105_v18  ;;  %v1168_v36 = vmax.f32 %v1114_v33, 0.0 }
 0x59d   :  { %v2362_v37 = vpop.f32.mrf.mxu1 }
 0x59e   :  { %v1166_v39 = vmax.f32 %v1106_v35, 0.0  ;;  %v1199_v43 = vpack.c.bf16 %v1168_v36, %v1167_v40  ;;  %v1127_v47 = vadd.f32 %v2362_v37, %v1989_v30 }
 0x59f   :  { %v1118_v41 = vpop.f32.mrf.mxu1 }
 0x5a0   :  { %v1198_v42 = vpack.c.bf16 %v1166_v39, %v1165_v38  ;;  %v1119_v45 = vadd.f32 %v1989_v30, %v1118_v41  ;;  %v1171_v62 = vmax.f32 %v1127_v47, 0.0 }
 0x5a1   :  { %v2363_v44 = vpop.f32.mrf.mxu1 }
 0x5a2   :  { %v1130_v46 = vadd.f32 %v2363_v44, %v1989_v30  ;;  %2388 = vmatprep.mubr.bf16.mxu0 %v1198_v42  ;;  %v1169_v59 = vmax.f32 %v1119_v45, 0.0 }
 0x5a3   :  { %v1121_v55 = vpop.f32.mrf.mxu1  ;;  %2389 = vmatmul.mubr.bf16.vlgmr.msra.gmra.mxu0 %v1199_v43 }
 0x5a4   :  { %v1122_v56 = vadd.f32 %v1989_v30, %v1121_v55  ;;  %v1172_v57 = vmax.f32 %v1130_v46, 0.0  ;;  %2437 = vmatpush3.bf16.msra.mxu0 %v2565_v28 }
 0x5a5   :  { %v2366_v58 = vpop.f32.mrf.mxu1  ;;  %2438 = vmatprep.subr.bf16.mxu0 %v2566_v29 }
 0x5a6   :  { %v1170_v61 = vmax.f32 %v1122_v56, 0.0  ;;  %v1201_v0 = vpack.c.bf16 %v1172_v57, %v1171_v62  ;;  %v1143_v4 = vadd.f32 %v2366_v58, %v1989_v30 }
 0x5a7   :  { %v1134_v63 = vpop.f32.mrf.mxu1 }
 0x5a8   :  { %v1200_v60 = vpack.c.bf16 %v1170_v61, %v1169_v59  ;;  %v1135_v2 = vadd.f32 %v1989_v30, %v1134_v63  ;;  %v1175_v11 = vmax.f32 %v1143_v4, 0.0  ;;  %2439 = vmatpush3.bf16.msra.mxu0 %v2566_v29 }
 0x5a9   :  { %v2367_v1 = vpop.f32.mrf.mxu1  ;;  %2440 = vmatprep.subr.bf16.mxu0 %v2567_v31 }
 0x5aa   :  { %v1146_v3 = vadd.f32 %v2367_v1, %v1989_v30  ;;  %2392 = vmatprep.mubr.bf16.mxu0 %v1200_v60  ;;  %v1173_v9 = vmax.f32 %v1135_v2, 0.0  ;;  %v2570_v60 = vld [vmem:[#allocation8 + $0x150] sm:$0xff]   ;;  %v2572_v1 = vld [vmem:[#allocation8 + $0x140] sm:$0xff]  }
 0x5ab   :  { %v1137_v5 = vpop.f32.mrf.mxu1  ;;  %2393 = vmatmul.mubr.bf16.gmra.mxu0 %v1201_v0  ;;  %v2571_v0 = vld [vmem:[#allocation8 + $0x148] sm:$0xff]  }
 0x5ac   :  { %v1138_v6 = vadd.f32 %v1989_v30, %v1137_v5  ;;  %v1176_v7 = vmax.f32 %v1146_v3, 0.0  ;;  %2441 = vmatpush3.bf16.msra.mxu0 %v2567_v31 }
 0x5ad   :  { %v2370_v8 = vpop.f32.mrf.mxu1  ;;  %2442 = vmatprep.subr.bf16.mxu0 %v2568_v32 }
 0x5ae   :  { %v1174_v10 = vmax.f32 %v1138_v6, 0.0  ;;  %v1203_v14 = vpack.c.bf16 %v1176_v7, %v1175_v11  ;;  %v1159_v19 = vadd.f32 %v2370_v8, %v1989_v30 }
 0x5af   :  { %v1150_v12 = vpop.f32.mrf.mxu1 }
 0x5b0   :  { %v1202_v13 = vpack.c.bf16 %v1174_v10, %v1173_v9  ;;  %v1151_v16 = vadd.f32 %v1989_v30, %v1150_v12  ;;  %v1179_v25 = vmax.f32 %v1159_v19, 0.0  ;;  %2443 = vmatpush3.bf16.msra.mxu0 %v2568_v32 }
 0x5b1   :  { %v2371_v15 = vpop.f32.mrf.mxu1 }
 0x5b2   :  { %v1162_v17 = vadd.f32 %v2371_v15, %v1989_v30  ;;  %2396 = vmatprep.mubr.bf16.mxu0 %v1202_v13  ;;  %v1177_v23 = vmax.f32 %v1151_v16, 0.0 }
 0x5b3   :  { %v1153_v20 = vpop.f32.mrf.mxu1  ;;  %2397 = vmatmul.mubr.bf16.gmra.mxu0 %v1203_v14 }
 0x5b4   :  { %v1154_v21 = vadd.f32 %v1989_v30, %v1153_v20  ;;  %v1180_v22 = vmax.f32 %v1162_v17, 0.0  ;;  %v2569_v30 = vld [vmem:[#allocation8 + $0x158] sm:$0xff]  }
 0x5b5   :  { %2444 = vmatprep.subr.bf16.mxu0 %v2569_v30 }
 0x5b6   :  { %v1178_v24 = vmax.f32 %v1154_v21, 0.0  ;;  %v1205_v27 = vpack.c.bf16 %v1180_v22, %v1179_v25  ;;  %2445 = vmatpush3.bf16.msra.mxu0 %v2569_v30 }
 0x5b7   :  { %2446 = vmatprep.subr.bf16.mxu0 %v2570_v60 }
 0x5b8   :  { %v1204_v26 = vpack.c.bf16 %v1178_v24, %v1177_v23 }
 0x5ba   :  { %2400 = vmatprep.mubr.bf16.mxu0 %v1204_v26  ;;  %2447 = vmatpush3.bf16.msra.mxu0 %v2570_v60  ;;  %v2577_v60 = vld [vmem:[#allocation8 + $0x198] sm:$0xff]  }
 0x5bb   :  { %2401 = vmatmul.mubr.bf16.gmra.mxu0 %v1205_v27  ;;  %2448 = vmatprep.subr.bf16.mxu0 %v2571_v0 }
 0x5be   :  { %2449 = vmatpush3.bf16.msra.mxu0 %v2571_v0  ;;  %v2578_v0 = vld [vmem:[#allocation8 + $0x190] sm:$0xff]  }
 0x5bf   :  { %2450 = vmatprep.subr.bf16.mxu0 %v2572_v1 }
 0x5c2   :  { %2451 = vmatpush3.bf16.msra.mxu0 %v2572_v1  ;;  %v2579_v1 = vld [vmem:[#allocation8 + $0x188] sm:$0xff]  }
 0x663   :  { %v2390_v33 = vpop.f32.mrf.mxu0 }
 0x665   :  { %v1288_v34 = vpop.f32.mrf.mxu0 }
 0x667   :  { %v2391_v18 = vpop.f32.mrf.mxu0 }
 0x668   :  { %v1352_v62 = vpack.c.bf16 %v2391_v18, %v2390_v33 }
 0x669   :  { %v1291_v35 = vpop.f32.mrf.mxu0 }
 0x66a   :  { %v1351_v63 = vpack.c.bf16 %v1291_v35, %v1288_v34 }
 0x66b   :  { %v2394_v36 = vpop.f32.mrf.mxu0 }
 0x66d   :  { %v1304_v37 = vpop.f32.mrf.mxu0 }
 0x66f   :  { %v2395_v38 = vpop.f32.mrf.mxu0 }
 0x670   :  { %v1354_v59 = vpack.c.bf16 %v2395_v38, %v2394_v36 }
 0x671   :  { %v1307_v39 = vpop.f32.mrf.mxu0 }
 0x672   :  { %v1353_v61 = vpack.c.bf16 %v1307_v39, %v1304_v37 }
 0x673   :  { %v2398_v40 = vpop.f32.mrf.mxu0 }
 0x675   :  { %v1320_v41 = vpop.f32.mrf.mxu0 }
 0x677   :  { %v2399_v42 = vpop.f32.mrf.mxu0 }
 0x678   :  { %v1356_v57 = vpack.c.bf16 %v2399_v42, %v2398_v40 }
 0x679   :  { %v1323_v43 = vpop.f32.mrf.mxu0 }
 0x67a   :  { %v1355_v58 = vpack.c.bf16 %v1323_v43, %v1320_v41 }
 0x67b   :  { %v2402_v44 = vpop.f32.mrf.mxu0 }
 0x67d   :  { %v1336_v45 = vpop.f32.mrf.mxu0 }
 0x67f   :  { %v2403_v46 = vpop.f32.mrf.mxu0 }
 0x680   :  { %v1358_v47 = vpack.c.bf16 %v2403_v46, %v2402_v44 }
 0x681   :  { %v1339_v55 = vpop.f32.mrf.mxu0 }
 0x682   :  { %v1357_v56 = vpack.c.bf16 %v1339_v55, %v1336_v45  ;;  %2404 = vmatprep.subr.bf16.mxu1 %v1358_v47 }
 0x683   :  { %2405 = vmatpush3.bf16.msra.mxu1 %v1358_v47 }
 0x684   :  { %2406 = vmatprep.subr.bf16.mxu1 %v1357_v56 }
 0x687   :  { %2407 = vmatpush3.bf16.msra.mxu1 %v1357_v56 }
 0x688   :  { %2408 = vmatprep.subr.bf16.mxu1 %v1356_v57 }
 0x68b   :  { %2409 = vmatpush3.bf16.msra.mxu1 %v1356_v57 }
 0x68c   :  { %2410 = vmatprep.subr.bf16.mxu1 %v1355_v58 }
 0x68f   :  { %2411 = vmatpush3.bf16.msra.mxu1 %v1355_v58 }
 0x690   :  { %2412 = vmatprep.subr.bf16.mxu1 %v1354_v59 }
 0x693   :  { %2413 = vmatpush3.bf16.msra.mxu1 %v1354_v59 }
 0x694   :  { %2414 = vmatprep.subr.bf16.mxu1 %v1353_v61 }
 0x697   :  { %2415 = vmatpush3.bf16.msra.mxu1 %v1353_v61 }
 0x698   :  { %2416 = vmatprep.subr.bf16.mxu1 %v1352_v62 }
 0x69b   :  { %2417 = vmatpush3.bf16.msra.mxu1 %v1352_v62  ;;  %v2575_v62 = vld [vmem:[#allocation8 + $0x1a8] sm:$0xff]  }
 0x69c   :  { %2418 = vmatprep.subr.bf16.mxu1 %v1351_v63 }
 0x69f   :  { %2419 = vmatpush3.bf16.msra.mxu1 %v1351_v63  ;;  %v2576_v63 = vld [vmem:[#allocation8 + $0x1a0] sm:$0xff]  }
 0x6a2   :  { %2421 = vmatmul.mubr.bf16.vlgmr.msra.gmra.mxu1 %v2889_v48  ;;  %v2573_v48 = vld [vmem:[#allocation8 + $0x1b8] sm:$0xff]  }
 0x6a3   :  { %2424 = vmatprep.mubr.bf16.mxu1 %v2891_v49  ;;  %v2574_v49 = vld [vmem:[#allocation8 + $0x1b0] sm:$0xff]   ;;  %2468 = vmatprep.subr.bf16.mxu1 %v2573_v48 }
 0x6a4   :  { %2469 = vmatpush3.bf16.msra.mxu1 %v2573_v48  ;;  %v2580_v48 = vld [vmem:[#allocation8 + $0x180] sm:$0xff]  }
 0x6a5   :  { %2470 = vmatprep.subr.bf16.mxu1 %v2574_v49 }
 0x6a8   :  { %2471 = vmatpush3.bf16.msra.mxu1 %v2574_v49 }
 0x6a9   :  { %2472 = vmatprep.subr.bf16.mxu1 %v2575_v62 }
 0x6aa   :  { %2425 = vmatmul.mubr.bf16.gmra.mxu1 %v2895_v50 }
 0x6ab   :  { %2428 = vmatprep.mubr.bf16.mxu1 %v2897_v51 }
 0x6ac   :  { %2473 = vmatpush3.bf16.msra.mxu1 %v2575_v62 }
 0x6ad   :  { %2474 = vmatprep.subr.bf16.mxu1 %v2576_v63 }
 0x6b0   :  { %2475 = vmatpush3.bf16.msra.mxu1 %v2576_v63 }
 0x6b1   :  { %2476 = vmatprep.subr.bf16.mxu1 %v2577_v60 }
 0x6b2   :  { %2429 = vmatmul.mubr.bf16.gmra.mxu1 %v2901_v52  ;;  %v1999_v52 = vld [vmem:[%s2969_s4 + $0x4] ss:$0 sm:$0xff] }
 0x6b3   :  { %2432 = vmatprep.mubr.bf16.mxu1 %v2903_v53 }
 0x6b4   :  { %2477 = vmatpush3.bf16.msra.mxu1 %v2577_v60 }
 0x6b5   :  { %2478 = vmatprep.subr.bf16.mxu1 %v2578_v0 }
 0x6b8   :  { %2479 = vmatpush3.bf16.msra.mxu1 %v2578_v0 }
 0x6b9   :  { %2480 = vmatprep.subr.bf16.mxu1 %v2579_v1 }
 0x6ba   :  { %2433 = vmatmul.mubr.bf16.gmra.mxu1 %v2907_v54 }
 0x6bc   :  { %2481 = vmatpush3.bf16.msra.mxu1 %v2579_v1 }
 0x6bd   :  { %2482 = vmatprep.subr.bf16.mxu1 %v2580_v48 }
 0x6c0   :  { %2483 = vmatpush3.bf16.msra.mxu1 %v2580_v48 }
 0x762   :  { %v2422_v50 = vpop.f32.mrf.mxu1 }
 0x763   :  { %v1410_v3 = vadd.f32 %v2422_v50, %v1999_v52  ;;  %v2001_v50 = vld [vmem:[%s2969_s4 + $0x5] ss:$0 sm:$0xff] }
 0x764   :  { %v1401_v51 = vpop.f32.mrf.mxu1 }
 0x765   :  { %v1402_v54 = vadd.f32 %v1999_v52, %v1401_v51  ;;  %v1466_v10 = vmax.f32 %v1410_v3, 0.0 }
 0x766   :  { %v2423_v53 = vpop.f32.mrf.mxu1 }
 0x767   :  { %v1413_v2 = vadd.f32 %v2423_v53, %v1999_v52  ;;  %v1464_v8 = vmax.f32 %v1402_v54, 0.0 }
 0x768   :  { %v1404_v4 = vpop.f32.mrf.mxu1 }
 0x769   :  { %v1405_v5 = vadd.f32 %v1999_v52, %v1404_v4  ;;  %v1467_v6 = vmax.f32 %v1413_v2, 0.0 }
 0x76a   :  { %v2426_v7 = vpop.f32.mrf.mxu1 }
 0x76b   :  { %v1465_v9 = vmax.f32 %v1405_v5, 0.0  ;;  %v1498_v13 = vpack.c.bf16 %v1467_v6, %v1466_v10  ;;  %v1426_v17 = vadd.f32 %v2426_v7, %v1999_v52 }
 0x76c   :  { %v1417_v11 = vpop.f32.mrf.mxu1 }
 0x76d   :  { %v1497_v12 = vpack.c.bf16 %v1465_v9, %v1464_v8  ;;  %v1418_v15 = vadd.f32 %v1999_v52, %v1417_v11  ;;  %v1470_v25 = vmax.f32 %v1426_v17, 0.0 }
 0x76e   :  { %v2427_v14 = vpop.f32.mrf.mxu1 }
 0x76f   :  { %v1429_v16 = vadd.f32 %v2427_v14, %v1999_v52  ;;  %2452 = vmatprep.mubr.bf16.mxu0 %v1497_v12  ;;  %v1468_v23 = vmax.f32 %v1418_v15, 0.0 }
 0x770   :  { %v1420_v19 = vpop.f32.mrf.mxu1  ;;  %2453 = vmatmul.mubr.bf16.vlgmr.msra.gmra.mxu0 %v1498_v13 }
 0x771   :  { %v1421_v20 = vadd.f32 %v1999_v52, %v1420_v19  ;;  %v1471_v21 = vmax.f32 %v1429_v16, 0.0 }
 0x772   :  { %v2430_v22 = vpop.f32.mrf.mxu1 }
 0x773   :  { %v1469_v24 = vmax.f32 %v1421_v20, 0.0  ;;  %v1500_v28 = vpack.c.bf16 %v1471_v21, %v1470_v25  ;;  %v1442_v30 = vadd.f32 %v2430_v22, %v1999_v52 }
 0x774   :  { %v1433_v26 = vpop.f32.mrf.mxu1 }
 0x775   :  { %v1499_v27 = vpack.c.bf16 %v1469_v24, %v1468_v23  ;;  %v1434_v31 = vadd.f32 %v1999_v52, %v1433_v26  ;;  %v1474_v38 = vmax.f32 %v1442_v30, 0.0 }
 0x776   :  { %v2431_v29 = vpop.f32.mrf.mxu1 }
 0x777   :  { %v1445_v32 = vadd.f32 %v2431_v29, %v1999_v52  ;;  %2456 = vmatprep.mubr.bf16.mxu0 %v1499_v27  ;;  %v1472_v36 = vmax.f32 %v1434_v31, 0.0 }
 0x778   :  { %v1436_v33 = vpop.f32.mrf.mxu1  ;;  %2457 = vmatmul.mubr.bf16.gmra.mxu0 %v1500_v28 }
 0x779   :  { %v1437_v34 = vadd.f32 %v1999_v52, %v1436_v33  ;;  %v1475_v18 = vmax.f32 %v1445_v32, 0.0 }
 0x77a   :  { %v2434_v35 = vpop.f32.mrf.mxu1 }
 0x77b   :  { %v1473_v37 = vmax.f32 %v1437_v34, 0.0  ;;  %v1502_v41 = vpack.c.bf16 %v1475_v18, %v1474_v38  ;;  %v1458_v45 = vadd.f32 %v2434_v35, %v1999_v52 }
 0x77c   :  { %v1449_v39 = vpop.f32.mrf.mxu1 }
 0x77d   :  { %v1501_v40 = vpack.c.bf16 %v1473_v37, %v1472_v36  ;;  %v1450_v43 = vadd.f32 %v1999_v52, %v1449_v39  ;;  %v1478_v58 = vmax.f32 %v1458_v45, 0.0 }
 0x77e   :  { %v2435_v42 = vpop.f32.mrf.mxu1 }
 0x77f   :  { %v1461_v44 = vadd.f32 %v2435_v42, %v1999_v52  ;;  %2460 = vmatprep.mubr.bf16.mxu0 %v1501_v40  ;;  %v1476_v56 = vmax.f32 %v1450_v43, 0.0 }
 0x780   :  { %v1452_v46 = vpop.f32.mrf.mxu1  ;;  %2461 = vmatmul.mubr.bf16.gmra.mxu0 %v1502_v41 }
 0x781   :  { %v1453_v47 = vadd.f32 %v1999_v52, %v1452_v46  ;;  %v1479_v55 = vmax.f32 %v1461_v44, 0.0 }
 0x783   :  { %v1477_v57 = vmax.f32 %v1453_v47, 0.0  ;;  %v1504_v61 = vpack.c.bf16 %v1479_v55, %v1478_v58 }
 0x785   :  { %v1503_v59 = vpack.c.bf16 %v1477_v57, %v1476_v56 }
 0x787   :  { %2464 = vmatprep.mubr.bf16.mxu0 %v1503_v59 }
 0x788   :  { %2465 = vmatmul.mubr.bf16.gmra.mxu0 %v1504_v61  ;;  %v2941_v61 = vld [vmem:[%s2969_s4 + $0x6] ss:$0 sm:$0xff]  ;;  %s2825_s4 = smov [#allocation10]  }
 0x789   :  { %s1921_s27 = sshll.u32 %s2825_s4, 4  ;;  %s1922_s27 = int_to_ptr.vmem [resolvable:$true] %s1921_s27 }
 0x78a   :  { %s2789_s28 = scalar_lea.vmem %s1922_s27, 2048  ;;  %p2794_p7 = scmp.lt.s32.totalorder %s1922_s27, %s1922_s27 }
 0x78b   :  { %p2790_p6 = scmp.ne.s32.totalorder %s1922_s27, %s2789_s28  ;;  %p2795_p8 = scmp.lt.s32.totalorder %s2789_s28, %s2789_s28 }
 0x78d   :  { %p2796_p9 = por %p2795_p8, %p2794_p7 }
 0x78f   :  { %p2797_p10 = pnand %p2796_p9, %p2790_p6 }
 0x830   :  { %v2454_v49 = vpop.f32.mrf.mxu0 }
 0x831   :  { %v1604_v2 = vadd.f32 %v2454_v49, %v2001_v50 }
 0x832   :  { %v1595_v51 = vpop.f32.mrf.mxu0 }
 0x833   :  { %v1596_v52 = vadd.f32 %v2001_v50, %v1595_v51 }
 0x834   :  { %v2455_v53 = vpop.f32.mrf.mxu0 }
 0x835   :  { %v1607_v54 = vadd.f32 %v2455_v53, %v2001_v50  ;;  %2645 = vtanh.f32 %v1596_v52 }
 0x836   :  { %v1598_v3 = vpop.f32.mrf.mxu0 }
 0x837   :  { %v1599_v4 = vadd.f32 %v2001_v50, %v1598_v3  ;;  %2647 = vtanh.f32 %v1607_v54 }
 0x838   :  { %v2458_v5 = vpop.f32.mrf.mxu0 }
 0x839   :  { %2649 = vtanh.f32 %v1599_v4  ;;  %v1620_v10 = vadd.f32 %v2458_v5, %v2001_v50  ;;  %v1870_v4 = vld [vmem:[#allocation7 + $0x10] sm:$0xff] }
 0x83a   :  { %2651 = vtanh.f32 %v1604_v2  ;;  %v1611_v6 = vpop.f32.mrf.mxu0 }
 0x83b   :  { %v1612_v7 = vadd.f32 %v2001_v50, %v1611_v6 }
 0x83c   :  { %v2459_v8 = vpop.f32.mrf.mxu0 }
 0x83d   :  { %v1623_v9 = vadd.f32 %v2459_v8, %v2001_v50  ;;  %2653 = vtanh.f32 %v1612_v7  ;;  %v1868_v8 = vld [vmem:[#allocation7] sm:$0xff] }
 0x83e   :  { %v1614_v11 = vpop.f32.mrf.mxu0 }
 0x83f   :  { %v1615_v12 = vadd.f32 %v2001_v50, %v1614_v11  ;;  %2655 = vtanh.f32 %v1623_v9 }
 0x840   :  { %v2462_v13 = vpop.f32.mrf.mxu0 }
 0x841   :  { %2657 = vtanh.f32 %v1615_v12  ;;  %v1636_v22 = vadd.f32 %v2462_v13, %v2001_v50  ;;  %v1871_v13 = vld [vmem:[#allocation7 + $0x18] sm:$0xff] }
 0x842   :  { %2659 = vtanh.f32 %v1620_v10  ;;  %v1627_v14 = vpop.f32.mrf.mxu0  ;;  %v2646_v16 = vpop.eup %2645 }
 0x843   :  { %v1628_v15 = vadd.f32 %v2001_v50, %v1627_v14 }
 0x844   :  { %v2463_v17 = vpop.f32.mrf.mxu0  ;;  %v2648_v19 = vpop.eup %2647 }
 0x845   :  { %v1639_v20 = vadd.f32 %v2463_v17, %v2001_v50  ;;  %2661 = vtanh.f32 %v1628_v15 }
 0x846   :  { %v2650_v21 = vpop.eup %2649  ;;  %v1630_v23 = vpop.f32.mrf.mxu0 }
 0x847   :  { %v2652_v24 = vpop.eup %2651  ;;  %v1631_v25 = vadd.f32 %v2001_v50, %v1630_v23  ;;  %v1691_v26 = vpack.c.bf16 %v2650_v21, %v2646_v16  ;;  %2663 = vtanh.f32 %v1639_v20 }
 0x848   :  { %v2466_v27 = vpop.f32.mrf.mxu0  ;;  %v1692_v28 = vpack.c.bf16 %v2648_v19, %v2652_v24  ;;  %v1869_v19 = vld [vmem:[#allocation7 + $0x8] sm:$0xff]  ;;  %v1874_v24 = vld [vmem:[#allocation7 + $0x30] sm:$0xff] }
 0x849   :  { %2665 = vtanh.f32 %v1631_v25  ;;  %2484 = vmatprep.mubr.bf16.mxu1 %v1691_v26  ;;  %v1652_v35 = vadd.f32 %v2466_v27, %v2001_v50 }
 0x84a   :  { %2667 = vtanh.f32 %v1636_v22  ;;  %v1643_v29 = vpop.f32.mrf.mxu0  ;;  %2485 = vmatmul.mubr.bf16.vlgmr.msra.gmra.mxu1 %v1692_v28  ;;  %v2654_v32 = vpop.eup %2653 }
 0x84b   :  { %v1644_v31 = vadd.f32 %v2001_v50, %v1643_v29  ;;  %v1872_v29 = vld [vmem:[#allocation7 + $0x20] sm:$0xff] }
 0x84c   :  { %v2467_v30 = vpop.f32.mrf.mxu0  ;;  %v2656_v33 = vpop.eup %2655 }
 0x84d   :  { %v1655_v34 = vadd.f32 %v2467_v30, %v2001_v50  ;;  %2669 = vtanh.f32 %v1644_v31 }
 0x84e   :  { %v2658_v18 = vpop.eup %2657  ;;  %v1646_v36 = vpop.f32.mrf.mxu0 }
 0x84f   :  { %v2660_v37 = vpop.eup %2659  ;;  %v1647_v38 = vadd.f32 %v2001_v50, %v1646_v36  ;;  %v1693_v39 = vpack.c.bf16 %v2658_v18, %v2654_v32  ;;  %2671 = vtanh.f32 %v1655_v34  ;;  %v1875_v34 = vld [vmem:[#allocation7 + $0x38] sm:$0xff] }
 0x850   :  { %v1694_v40 = vpack.c.bf16 %v2656_v33, %v2660_v37 }
 0x851   :  { %2673 = vtanh.f32 %v1647_v38  ;;  %2488 = vmatprep.mubr.bf16.mxu1 %v1693_v39  ;;  %v1873_v38 = vld [vmem:[#allocation7 + $0x28] sm:$0xff] }
 0x852   :  { %2675 = vtanh.f32 %v1652_v35  ;;  %2489 = vmatmul.mubr.bf16.gmra.mxu1 %v1694_v40  ;;  %v2662_v41 = vpop.eup %2661 }
 0x854   :  { %v2664_v42 = vpop.eup %2663 }
 0x856   :  { %v2666_v43 = vpop.eup %2665 }
 0x857   :  { %v2668_v44 = vpop.eup %2667  ;;  %v1695_v45 = vpack.c.bf16 %v2666_v43, %v2662_v41  ;;  %v1878_v43 = vld [vmem:[#allocation7 + $0x50] sm:$0xff] }
 0x858   :  { %v1696_v46 = vpack.c.bf16 %v2664_v42, %v2668_v44 }
 0x859   :  { %2492 = vmatprep.mubr.bf16.mxu1 %v1695_v45 }
 0x85a   :  { %2493 = vmatmul.mubr.bf16.gmra.mxu1 %v1696_v46  ;;  %v2670_v47 = vpop.eup %2669 }
 0x85c   :  { %v2672_v55 = vpop.eup %2671 }
 0x85e   :  { %v2674_v56 = vpop.eup %2673 }
 0x85f   :  { %v2676_v57 = vpop.eup %2675  ;;  %v1697_v58 = vpack.c.bf16 %v2674_v56, %v2670_v47 }
 0x860   :  { %v1698_v59 = vpack.c.bf16 %v2672_v55, %v2676_v57  ;;  %v1876_v55 = vld [vmem:[#allocation7 + $0x40] sm:$0xff] }
 0x861   :  { %2496 = vmatprep.mubr.bf16.mxu1 %v1697_v58  ;;  %v1879_v58 = vld [vmem:[#allocation7 + $0x58] sm:$0xff] }
 0x862   :  { %2497 = vmatmul.mubr.bf16.gmra.mxu1 %v1698_v59 }
 0x90a   :  { %v2486_v62 = vpop.f32.mrf.mxu1 }
 0x90b   :  { %v1798_v63 = vadd.f32 %v2486_v62, %v2941_v61 }
 0x90c   :  { %v1789_v60 = vpop.f32.mrf.mxu1 }
 0x90d   :  { %2677 = vtanh.f32 %v1798_v63  ;;  %v1790_v0 = vadd.f32 %v2941_v61, %v1789_v60  ;;  %v1877_v63 = vld [vmem:[#allocation7 + $0x48] sm:$0xff] }
 0x90e   :  { %v2487_v1 = vpop.f32.mrf.mxu1 }
 0x90f   :  { %2679 = vtanh.f32 %v1790_v0  ;;  %v1801_v48 = vadd.f32 %v2487_v1, %v2941_v61  ;;  %v1882_v1 = vld [vmem:[#allocation7 + $0x70] sm:$0xff] }
 0x910   :  { %v1792_v49 = vpop.f32.mrf.mxu1 }
 0x911   :  { %2681 = vtanh.f32 %v1801_v48  ;;  %v1793_v50 = vadd.f32 %v2941_v61, %v1792_v49 }
 0x912   :  { %v2490_v51 = vpop.f32.mrf.mxu1 }
 0x913   :  { %2683 = vtanh.f32 %v1793_v50  ;;  %v1814_v52 = vadd.f32 %v2490_v51, %v2941_v61  ;;  %v1880_v50 = vld [vmem:[#allocation7 + $0x60] sm:$0xff] }
 0x914   :  { %v1805_v53 = vpop.f32.mrf.mxu1 }
 0x915   :  { %2685 = vtanh.f32 %v1814_v52  ;;  %v1806_v54 = vadd.f32 %v2941_v61, %v1805_v53  ;;  %v1883_v52 = vld [vmem:[#allocation7 + $0x78] sm:$0xff] }
 0x916   :  { %v2491_v2 = vpop.f32.mrf.mxu1 }
 0x917   :  { %2687 = vtanh.f32 %v1806_v54  ;;  %v1817_v3 = vadd.f32 %v2491_v2, %v2941_v61  ;;  %v1881_v2 = vld [vmem:[#allocation7 + $0x68] sm:$0xff] }
 0x918   :  { %v1808_v5 = vpop.f32.mrf.mxu1 }
 0x919   :  { %2689 = vtanh.f32 %v1817_v3  ;;  %v1809_v6 = vadd.f32 %v2941_v61, %v1808_v5 }
 0x91a   :  { %v2678_v7 = vpop.eup %2677  ;;  %v2494_v9 = vpop.f32.mrf.mxu1 }
 0x91b   :  { %v1886_v10 = vadd.f32 %v2678_v7, %v1870_v4  ;;  %2691 = vtanh.f32 %v1809_v6  ;;  %v1830_v11 = vadd.f32 %v2494_v9, %v2941_v61 }
 0x91c   :  { %v2680_v12 = vpop.eup %2679  ;;  %v1821_v14 = vpop.f32.mrf.mxu1 }
 0x91d   :  { %1902 = vst [vmem:[#allocation10 + $0x10] sm:$0xff] %v1886_v10  ;;  %v1884_v15 = vadd.f32 %v2680_v12, %v1868_v8  ;;  %2693 = vtanh.f32 %v1830_v11  ;;  %v1822_v16 = vadd.f32 %v2941_v61, %v1821_v14 }
 0x91e   :  { %v2682_v17 = vpop.eup %2681  ;;  %v2495_v20 = vpop.f32.mrf.mxu1 }
 0x91f   :  { %1900 = vst [vmem:[#allocation10] sm:$0xff] %v1884_v15  ;;  %v1887_v21 = vadd.f32 %v2682_v17, %v1871_v13  ;;  %2695 = vtanh.f32 %v1822_v16  ;;  %v1833_v22 = vadd.f32 %v2495_v20, %v2941_v61 }
 0x920   :  { %v2684_v23 = vpop.eup %2683  ;;  %v1824_v25 = vpop.f32.mrf.mxu1 }
 0x921   :  { %1903 = vst [vmem:[#allocation10 + $0x18] sm:$0xff] %v1887_v21  ;;  %v1885_v26 = vadd.f32 %v2684_v23, %v1869_v19  ;;  %2697 = vtanh.f32 %v1833_v22  ;;  %v1825_v27 = vadd.f32 %v2941_v61, %v1824_v25 }
 0x922   :  { %v2686_v28 = vpop.eup %2685  ;;  %v2498_v31 = vpop.f32.mrf.mxu1 }
 0x923   :  { %1901 = vst [vmem:[#allocation10 + $0x8] sm:$0xff] %v1885_v26  ;;  %v1890_v32 = vadd.f32 %v2686_v28, %v1874_v24  ;;  %2699 = vtanh.f32 %v1825_v27  ;;  %v1846_v30 = vadd.f32 %v2498_v31, %v2941_v61 }
 0x924   :  { %v2688_v33 = vpop.eup %2687  ;;  %v1837_v18 = vpop.f32.mrf.mxu1 }
 0x925   :  { %1906 = vst [vmem:[#allocation10 + $0x30] sm:$0xff] %v1890_v32  ;;  %v1888_v35 = vadd.f32 %v2688_v33, %v1872_v29  ;;  %2701 = vtanh.f32 %v1846_v30  ;;  %v1838_v36 = vadd.f32 %v2941_v61, %v1837_v18 }
 0x926   :  { %v2690_v37 = vpop.eup %2689  ;;  %v2499_v39 = vpop.f32.mrf.mxu1 }
 0x927   :  { %1904 = vst [vmem:[#allocation10 + $0x20] sm:$0xff] %v1888_v35  ;;  %v1891_v40 = vadd.f32 %v2690_v37, %v1875_v34  ;;  %2703 = vtanh.f32 %v1838_v36  ;;  %v1849_v41 = vadd.f32 %v2499_v39, %v2941_v61 }
 0x928   :  { %v2692_v42 = vpop.eup %2691  ;;  %v1840_v44 = vpop.f32.mrf.mxu1 }
 0x929   :  { %1907 = vst [vmem:[#allocation10 + $0x38] sm:$0xff] %v1891_v40  ;;  %v1889_v45 = vadd.f32 %v2692_v42, %v1873_v38  ;;  %2705 = vtanh.f32 %v1849_v41  ;;  %v1841_v46 = vadd.f32 %v2941_v61, %v1840_v44 }
 0x92a   :  { %v2694_v47 = vpop.eup %2693 }
 0x92b   :  { %1905 = vst [vmem:[#allocation10 + $0x28] sm:$0xff] %v1889_v45  ;;  %v1894_v56 = vadd.f32 %v2694_v47, %v1878_v43  ;;  %2707 = vtanh.f32 %v1841_v46 }
 0x92c   :  { %v2696_v57 = vpop.eup %2695 }
 0x92d   :  { %1910 = vst [vmem:[#allocation10 + $0x50] sm:$0xff] %v1894_v56  ;;  %v1892_v59 = vadd.f32 %v2696_v57, %v1876_v55 }
 0x92e   :  { %v2698_v62 = vpop.eup %2697 }
 0x92f   :  { %1908 = vst [vmem:[#allocation10 + $0x40] sm:$0xff] %v1892_v59  ;;  %v1895_v60 = vadd.f32 %v2698_v62, %v1879_v58 }
 0x930   :  { %v2700_v0 = vpop.eup %2699 }
 0x931   :  { %1911 = vst [vmem:[#allocation10 + $0x58] sm:$0xff] %v1895_v60  ;;  %v1893_v48 = vadd.f32 %v2700_v0, %v1877_v63 }
 0x932   :  { %v2702_v49 = vpop.eup %2701 }
 0x933   :  { %1909 = vst [vmem:[#allocation10 + $0x48] sm:$0xff] %v1893_v48  ;;  %v1898_v61 = vadd.f32 %v2702_v49, %v1882_v1 }
 0x934   :  { %v2704_v51 = vpop.eup %2703 }
 0x935   :  { %1914 = vst [vmem:[#allocation10 + $0x70] sm:$0xff] %v1898_v61  ;;  %v1896_v53 = vadd.f32 %v2704_v51, %v1880_v50 }
 0x936   :  { %v2706_v54 = vpop.eup %2705 }
 0x937   :  { %1912 = vst [vmem:[#allocation10 + $0x60] sm:$0xff] %v1896_v53  ;;  %v1899_v3 = vadd.f32 %v2706_v54, %v1883_v52 }
 0x938   :  { %v2708_v4 = vpop.eup %2707 }
 0x939   :  { %1915 = vst [vmem:[#allocation10 + $0x78] sm:$0xff] %v1899_v3  ;;  %v1897_v5 = vadd.f32 %v2708_v4, %v1881_v2 }
 0x93b   :  { %1913 = vst [vmem:[#allocation10 + $0x68] sm:$0xff] %v1897_v5 }
 0x93c   :  { %2800 = shalt.err (!%p2797_p10)
}
 0x93d   :  { %1927 = dma.vmem_to_hbm [thread:$0]  %s1922_s27, 2048, %s2970_s5, [#allocation4], %s2822_s1, %s2822_s1, %s2823_s8  }
 0x93e   :  { %2815 = dma.done.wait [#allocation4], 2048  }
 0x93f   :  { %2816 = vsyncadd [#allocation4], 4294965248 }
 0x940   :  { %1931 = vsyncpa [#allocation3], 1 }
 0x941   :  { %1932 = vsyncpa [#allocation6], 1 }
 0x942   :  { %1933 = vsyncpa [#allocation9], 1 }
 0x943   :  { %1934 = vsyncpa [#allocation4], 1 }

</bundles_post_ra>
